<compile_context>
chip_gen: v7x
topology: tpu7x:2x2x1
jax: 0.10.0
libtpu: 0.0.40
codegen_flags: <defaults>
</compile_context>

<pallas_src>
import jax
import jax.numpy as jnp
from jax import lax
from jax.experimental import pallas as pl
from jax.experimental.pallas import tpu as pltpu

EPS_NORM = 1e-6             # F.normalize eps
EPS_BLEND = 1e-10           # softmax_rgb_blend eps
ATTR_D = 8                  # per-vertex attributes: xyz (3) + normal (3) + uv (2)
DEFAULT_MAX_ROWS = 512      # (512,128) f32 tiles: ~85% of HBM roofline on v6e
VMEM_LIMIT_BYTES = 48 * 1024 * 1024   # < v7x 64 MiB/TC; >> v5e 16 MiB scoped default
BG_DIST = 1e10              # background dists -> sigmoid(-d/sigma) == 0 exactly


def _round_up(x, m):
    return ((x + m - 1) // m) * m


def _select_tile(pixel_rows, batch, max_rows=DEFAULT_MAX_ROWS):
    """Row tile (multiple of 8) for the (rows, 128) pixel layout.

    Big tiles amortize the ~0.35 us per-grid-step pipeline overhead.  When the
    batch alone cannot feed both v7x TensorCores, cap the tile so the pixel
    axis still has >= 2 blocks to split across cores.
    """
    tile = min(_round_up(pixel_rows, 8), max_rows)
    if batch < 2 and pixel_rows > 8:
        tile = min(tile, _round_up(pl.cdiv(pixel_rows, 2), 8))
    return tile


# --------------------------------------------------------------------------
# Pallas kernel A: barycentric interpolation fused with Phong geometry.
#   Channel-major over a flat (face, pixel) axis reshaped to (rows, 128);
#   every op works on dense (tile, 128) vreg tiles.
#   Outputs: uv (2 ch), diffuse_ang, spec_ang.
# --------------------------------------------------------------------------
def geom_kernel(params_ref, attrs_ref, bary_ref, uv_ref, diff_ref, spec_ref):
    n = pl.program_id(0)

    def p(i):
        return params_ref[n, i]

    lx, ly, lz = p(0), p(1), p(2)          # point-light location
    cx, cy, cz = p(3), p(4), p(5)          # camera center
    shin = p(15)                           # shininess

    b0 = bary_ref[0, 0]                    # (tile, 128)
    b1 = bary_ref[0, 1]
    b2 = bary_ref[0, 2]

    def interp(d):
        # bary coords are pre-multiplied by the pixel mask in the glue, so
        # background pixels interpolate to exactly zero (no mask channel).
        # attrs channels: vertex-major (v0: 0..7, v1: 8..15, v2: 16..23)
        return (b0 * attrs_ref[d, 0]
                + b1 * attrs_ref[ATTR_D + d, 0]
                + b2 * attrs_ref[2 * ATTR_D + d, 0])

    px, py, pz = interp(0), interp(1), interp(2)   # pixel coords
    nx, ny, nz = interp(3), interp(4), interp(5)   # pixel normals
    uv_ref[0, 0] = interp(6)
    uv_ref[0, 1] = interp(7)

    eps2 = EPS_NORM * EPS_NORM

    # --- normalize interpolated normals (F.normalize, eps=1e-6) via rsqrt ---
    inv_n = lax.rsqrt(jnp.maximum(nx * nx + ny * ny + nz * nz, eps2))
    nx, ny, nz = nx * inv_n, ny * inv_n, nz * inv_n

    # --- diffuse term ---
    dx, dy, dz = lx - px, ly - py, lz - pz
    inv_d = lax.rsqrt(jnp.maximum(dx * dx + dy * dy + dz * dz, eps2))
    dx, dy, dz = dx * inv_d, dy * inv_d, dz * inv_d
    cos_nl = nx * dx + ny * dy + nz * dz
    diff_ref[0] = jnp.maximum(cos_nl, 0.0)

    # --- specular term ---
    rx = 2.0 * cos_nl * nx - dx
    ry = 2.0 * cos_nl * ny - dy
    rz = 2.0 * cos_nl * nz - dz
    vx, vy, vz = cx - px, cy - py, cz - pz
    inv_v = lax.rsqrt(jnp.maximum(vx * vx + vy * vy + vz * vz, eps2))
    cos_rv = jnp.maximum((rx * vx + ry * vy + rz * vz) * inv_v, 0.0)
    alpha_s = jnp.where(cos_nl > 0.0, cos_rv, 0.0)
    # pow(alpha, shininess) via exp/log (alpha >= 0, shininess > 0)
    spec_ref[0] = jnp.where(
        alpha_s > 0.0,
        jnp.exp(shin * jnp.log(jnp.maximum(alpha_s, 1e-30))),
        0.0)


def phong_geometry_pallas(params, attrs, bary, *, tile):
    C3, N, rows, _ = attrs.shape           # C3 = 3 * ATTR_D = 24, rows % tile == 0
    grid = (N, rows // tile)
    grid_spec = pltpu.PrefetchScalarGridSpec(
        num_scalar_prefetch=1,             # params -> SMEM
        grid=grid,
        in_specs=[
            pl.BlockSpec((C3, 1, tile, 128), lambda n, t, prm: (0, n, t, 0)),
            pl.BlockSpec((1, 3, tile, 128), lambda n, t, prm: (n, 0, t, 0)),
        ],
        out_specs=[
            pl.BlockSpec((1, 2, tile, 128), lambda n, t, prm: (n, 0, t, 0)),
            pl.BlockSpec((1, tile, 128), lambda n, t, prm: (n, t, 0)),
            pl.BlockSpec((1, tile, 128), lambda n, t, prm: (n, t, 0)),
        ],
    )
    return pl.pallas_call(
        geom_kernel,
        out_shape=(
            jax.ShapeDtypeStruct((N, 2, rows, 128), jnp.float32),
            jax.ShapeDtypeStruct((N, rows, 128), jnp.float32),
            jax.ShapeDtypeStruct((N, rows, 128), jnp.float32),
        ),
        grid_spec=grid_spec,
        compiler_params=pltpu.CompilerParams(
            dimension_semantics=("parallel", "parallel"),
            vmem_limit_bytes=VMEM_LIMIT_BYTES),
    )(params, attrs, bary)


# --------------------------------------------------------------------------
# Pallas kernel B: Phong color composition + softmax RGB blend over K faces.
#   K sits on a leading block dim; per-k slices are dense (tile, 128) tiles.
#   Background handling relies on the glue rewriting zbuf->zfar and
#   dists->+large, so no mask channel is streamed.
# --------------------------------------------------------------------------
def blend_kernel(params_ref, texels_ref, diff_ref, spec_ref,
                 zbuf_ref, dists_ref, out_ref, pz_ref):
    n = pl.program_id(0)
    K = zbuf_ref.shape[1]

    def p(i):
        return params_ref[n, i]

    amb = (p(6), p(7), p(8))               # material.ambient * light.ambient
    dif = (p(9), p(10), p(11))             # material.diffuse * light.diffuse
    spc = (p(12), p(13), p(14))            # material.specular * light.specular
    bg = (p(16), p(17), p(18))             # background color
    sigma, gamma, znear, zfar = p(19), p(20), p(21), p(22)
    inv_sigma = 1.0 / sigma                # scalar recips: once per grid step
    inv_gamma = 1.0 / gamma
    zrange = zfar - znear

    # --- pass 1: per-face probability / inverse depth, alpha product, zmax ---
    alpha = None
    zmax = None
    for k in range(K):
        # sigmoid(-dists/sigma); background dists = +large -> exp = inf -> pk = 0
        pk = 1.0 / (1.0 + jnp.exp(dists_ref[0, k] * inv_sigma))
        # keep the divide (not *inv_zrange): its error is amplified by 1/gamma
        # in the softmax exponent, so we match the reference expression.
        zk = (zfar - zbuf_ref[0, k]) / zrange      # background zbuf = zfar -> 0
        pz_ref[0, k] = pk
        pz_ref[1, k] = zk
        alpha = (1.0 - pk) if alpha is None else alpha * (1.0 - pk)
        zmax = zk if zmax is None else jnp.maximum(zmax, zk)
    zmax = jnp.maximum(zmax, EPS_BLEND)

    delta = jnp.maximum(jnp.exp((EPS_BLEND - zmax) * inv_gamma), EPS_BLEND)

    # --- pass 2: fused softmax weights + weighted color accumulation ---------
    wsum = delta
    acc_r = delta * bg[0]
    acc_g = delta * bg[1]
    acc_b = delta * bg[2]
    for k in range(K):
        wk = pz_ref[0, k] * jnp.exp((pz_ref[1, k] - zmax) * inv_gamma)
        wsum = wsum + wk
        d_k = diff_ref[0, k]
        s_k = spec_ref[0, k]
        acc_r = acc_r + wk * ((amb[0] + dif[0] * d_k) * texels_ref[0, k, 0]
                              + spc[0] * s_k)
        acc_g = acc_g + wk * ((amb[1] + dif[1] * d_k) * texels_ref[0, k, 1]
                              + spc[1] * s_k)
        acc_b = acc_b + wk * ((amb[2] + dif[2] * d_k) * texels_ref[0, k, 2]
                              + spc[2] * s_k)

    # approx=True also works (error ~2^-12) but full precision keeps the 1e-3
    # validation tolerance with comfortable margin; cost is hidden (HBM-bound).
    inv_denom = pl.reciprocal(wsum, approx=False)
    out_ref[0, 0] = acc_r * inv_denom
    out_ref[0, 1] = acc_g * inv_denom
    out_ref[0, 2] = acc_b * inv_denom
    out_ref[0, 3] = 1.0 - alpha


def phong_blend_pallas(params, texels, diff, spec, zbuf, dists, *, tile):
    N, K, _, rows, _ = texels.shape        # rows % tile == 0
    grid = (N, rows // tile)
    grid_spec = pltpu.PrefetchScalarGridSpec(
        num_scalar_prefetch=1,             # params -> SMEM
        grid=grid,
        in_specs=[
            pl.BlockSpec((1, K, 3, tile, 128), lambda n, t, prm: (n, 0, 0, t, 0)),
            pl.BlockSpec((1, K, tile, 128), lambda n, t, prm: (n, 0, t, 0)),
            pl.BlockSpec((1, K, tile, 128), lambda n, t, prm: (n, 0, t, 0)),
            pl.BlockSpec((1, K, tile, 128), lambda n, t, prm: (n, 0, t, 0)),
            pl.BlockSpec((1, K, tile, 128), lambda n, t, prm: (n, 0, t, 0)),
        ],
        out_specs=pl.BlockSpec((1, 4, tile, 128), lambda n, t, prm: (n, 0, t, 0)),
        scratch_shapes=[pltpu.VMEM((2, K, tile, 128), jnp.float32)],
    )
    return pl.pallas_call(
        blend_kernel,
        out_shape=jax.ShapeDtypeStruct((N, 4, rows, 128), jnp.float32),
        grid_spec=grid_spec,
        compiler_params=pltpu.CompilerParams(
            dimension_semantics=("parallel", "parallel"),
            vmem_limit_bytes=VMEM_LIMIT_BYTES),
    )(params, texels, diff, spec, zbuf, dists)


# --------------------------------------------------------------------------
# Plain-JAX glue: bilinear grid_sample (align_corners=False, zeros padding)
# --------------------------------------------------------------------------
def grid_sample_bilinear_zeros(image, grid):
    # image: (B, C, Hin, Win);  grid: (B, Hout, Wout, 2) with (x, y) in [-1, 1]
    B, C, Hin, Win = image.shape
    x, y = grid[..., 0], grid[..., 1]
    ix = ((x + 1.0) * Win - 1.0) / 2.0
    iy = ((y + 1.0) * Hin - 1.0) / 2.0
    ix0, iy0 = jnp.floor(ix), jnp.floor(iy)
    ix1, iy1 = ix0 + 1.0, iy0 + 1.0
    wx1, wy1 = ix - ix0, iy - iy0
    wx0, wy0 = 1.0 - wx1, 1.0 - wy1
    b = jnp.arange(B)[:, None, None]

    def sample(iy_f, ix_f, w):
        valid = ((ix_f >= 0) & (ix_f <= Win - 1) & (iy_f >= 0) & (iy_f <= Hin - 1))
        ixc = jnp.clip(ix_f, 0, Win - 1).astype(jnp.int32)
        iyc = jnp.clip(iy_f, 0, Hin - 1).astype(jnp.int32)
        vals = image[b, :, iyc, ixc]                      # (B, Ho, Wo, C)
        return vals * (w * valid.astype(image.dtype))[..., None]

    out = (sample(iy0, ix0, wy0 * wx0) + sample(iy0, ix1, wy0 * wx1)
           + sample(iy1, ix0, wy1 * wx0) + sample(iy1, ix1, wy1 * wx1))
    return jnp.transpose(out, (0, 3, 1, 2))               # (B, C, Ho, Wo)


# --------------------------------------------------------------------------
# Full forward (TexturedPhongShader.forward)
# --------------------------------------------------------------------------
def textured_phong_forward(pix_to_face, bary_coords, zbuf, dists,
                           verts, faces, verts_normals, verts_uvs, faces_uvs,
                           texture_maps, params, *, max_rows=DEFAULT_MAX_ROWS):
    N, H, W, K = pix_to_face.shape
    HW = H * W
    HWr0 = pl.cdiv(HW, 128)                # raw pixel rows of 128
    tile = _select_tile(HWr0, N, max_rows)
    HWr = _round_up(HWr0, tile)            # pixel rows padded to a tile multiple
    HW_pad = HWr * 128
    rows_a = K * HWr                       # flattened (face, pixel) rows

    def pad_px(x):
        if HW_pad == HW:
            return x
        pad = [(0, 0)] * (x.ndim - 1) + [(0, HW_pad - HW)]
        return jnp.pad(x, pad)

    # --- glue: background rewrite + layout packing (k-major, channel-major,
    #           pixels on lanes).  The rewrites replace the mask channels:
    #   bary * mask      -> interpolation == 0 for background pixels
    #   zbuf -> zfar     -> z_inv == 0
    #   dists -> +large  -> sigmoid prob == 0
    maskb = pix_to_face >= 0
    maskf = maskb.astype(jnp.float32)
    zfar_b = params[:, 22].reshape(N, 1, 1, 1)

    idx = jnp.where(maskb, pix_to_face, 0)
    zbuf_bg = jnp.where(maskb, zbuf, zfar_b)
    dists_bg = jnp.where(maskb, dists, BG_DIST)
    bary_m = bary_coords * maskf[..., None]

    idx_t = jnp.transpose(idx.reshape(N, HW, K), (0, 2, 1))             # (N,K,HW)
    zbuf_t = jnp.transpose(zbuf_bg.reshape(N, HW, K), (0, 2, 1))
    dists_t = jnp.transpose(dists_bg.reshape(N, HW, K), (0, 2, 1))
    bary_t = jnp.transpose(bary_m.reshape(N, HW, K, 3), (0, 3, 2, 1))    # (N,3,K,HW)
    idx_t, zbuf_t, dists_t, bary_t = map(pad_px, (idx_t, zbuf_t, dists_t, bary_t))

    # --- glue: face-attribute gather — contiguous 96 B row gather per
    #           face-pixel + one fused transpose into channel-major layout.
    face_attrs = jnp.concatenate(
        [verts[faces], verts_normals[faces], verts_uvs[faces_uvs]], axis=-1)  # (F,3,8)
    gathered = face_attrs.reshape(-1, 3 * ATTR_D)[idx_t.reshape(-1)]          # (N*K*HW_pad,24)
    attrs = jnp.transpose(gathered.reshape(N, rows_a, 128, 3 * ATTR_D),
                          (3, 0, 1, 2))                                       # (24,N,rows_a,128)

    bary_a = bary_t.reshape(N, 3, rows_a, 128)

    # kernel A: barycentric interpolation fused with Phong geometry
    uv, diff_ang, spec_ang = phong_geometry_pallas(params, attrs, bary_a, tile=tile)

    # --- glue: texture sampling (pytorch3d.interpolate_texture_map) ---------
    # TODO(synk): bilinear texture gather (F.grid_sample) is a data-dependent
    # gather with no clean Pallas equivalent; kept in plain JAX.
    Ht, Wt = texture_maps.shape[1:3]
    uv_flat = uv.reshape(N, 2, K, HW_pad)[:, :, :, :HW]
    pixel_uvs = jnp.transpose(uv_flat, (0, 2, 3, 1)).reshape(N * K, H, W, 2)
    grid = pixel_uvs * 2.0 - 1.0
    tex = jnp.transpose(texture_maps, (0, 3, 1, 2))                    # (N,3,Ht,Wt)
    tex = jnp.repeat(tex[:, None], K, axis=1).reshape(N * K, 3, Ht, Wt)
    tex = jnp.flip(tex, axis=2)                                        # flip y axis
    texels = grid_sample_bilinear_zeros(tex, grid)                     # (N*K,3,H,W)
    texels_b = pad_px(texels.reshape(N, K, 3, HW)).reshape(N, K, 3, HWr, 128)

    # kernel B: Phong color composition + softmax RGB blend
    diff_b = diff_ang.reshape(N, K, HWr, 128)
    spec_b = spec_ang.reshape(N, K, HWr, 128)
    zbuf_b = zbuf_t.reshape(N, K, HWr, 128)
    dists_b = dists_t.reshape(N, K, HWr, 128)
    out = phong_blend_pallas(params, texels_b, diff_b, spec_b,
                             zbuf_b, dists_b, tile=tile)               # (N,4,HWr,128)

    out = out.reshape(N, 4, HW_pad)[:, :, :HW]
    return jnp.transpose(out, (0, 2, 1)).reshape(N, H, W, 4)


# --------------------------------------------------------------------------
# Pure-JAX reference (mirrors the PyTorch3D math) for validation
# --------------------------------------------------------------------------
def reference_forward(pix_to_face, bary_coords, zbuf, dists,
                      verts, faces, verts_normals, verts_uvs, faces_uvs,
                      texture_maps, light_loc, cam_pos, amb, dif, spc, shin,
                      bg, sigma, gamma, znear, zfar):
    N, H, W, K = pix_to_face.shape
    mask = pix_to_face >= 0
    idx = jnp.where(mask, pix_to_face, 0)

    def interp(face_attr):
        pix = face_attr[idx]
        return (bary_coords[..., None] * pix).sum(-2) * mask[..., None]

    coords = interp(verts[faces])
    normals = interp(verts_normals[faces])
    uvs = interp(verts_uvs[faces_uvs])

    Ht, Wt = texture_maps.shape[1:3]
    pixel_uvs = jnp.transpose(uvs, (0, 3, 1, 2, 4)).reshape(N * K, H, W, 2) * 2.0 - 1.0
    tex = jnp.transpose(texture_maps, (0, 3, 1, 2))
    tex = jnp.repeat(tex[:, None], K, axis=1).reshape(N * K, 3, Ht, Wt)
    tex = jnp.flip(tex, axis=2)
    texels = grid_sample_bilinear_zeros(tex, pixel_uvs)
    texels = jnp.transpose(texels.reshape(N, K, 3, H, W), (0, 3, 4, 1, 2))  # (N,H,W,K,3)

    def normalize(v):
        return v / jnp.maximum(jnp.linalg.norm(v, axis=-1, keepdims=True), EPS_NORM)

    nrm = normalize(normals)
    ldir = normalize(light_loc[:, None, None, None, :] - coords)
    cos_nl = (nrm * ldir).sum(-1)
    diffuse = jnp.maximum(cos_nl, 0.0)[..., None] * dif[:, None, None, None, :]

    spec_valid = (cos_nl > 0.0).astype(jnp.float32)
    reflect = -ldir + 2.0 * cos_nl[..., None] * nrm
    vdir = normalize(cam_pos[:, None, None, None, :] - coords)
    cos_rv = jnp.maximum((reflect * vdir).sum(-1), 0.0)
    alpha_s = spec_valid * cos_rv
    spec_ang = jnp.where(alpha_s > 0.0,
                         jnp.exp(shin * jnp.log(jnp.maximum(alpha_s, 1e-30))), 0.0)
    specular = spec_ang[..., None] * spc[:, None, None, None, :]
    colors = (amb[:, None, None, None, :] + diffuse) * texels + specular

    maskf = mask.astype(jnp.float32)
    prob = (1.0 / (1.0 + jnp.exp(dists / sigma))) * maskf
    alpha = jnp.prod(1.0 - prob, axis=-1)
    z_inv = (zfar - zbuf) / (zfar - znear) * maskf
    zmax = jnp.maximum(jnp.max(z_inv, axis=-1, keepdims=True), EPS_BLEND)
    weights = prob * jnp.exp((z_inv - zmax) / gamma)
    delta = jnp.maximum(jnp.exp((EPS_BLEND - zmax[..., 0]) / gamma), EPS_BLEND)
    denom = weights.sum(-1) + delta
    weighted = (weights[..., None] * colors).sum(-2)
    rgb = (weighted + delta[..., None] * bg[None, None, None, :]) / denom[..., None]
    return jnp.concatenate([rgb, (1.0 - alpha)[..., None]], axis=-1)


if __name__ == "__main__":
    key = jax.random.PRNGKey(0)
    N, H, W, K = 2, 16, 16, 4          # fragments: (N, H, W, K)
    V, F, Vt = 12, 20, 15              # mesh sizes
    Ht, Wt = 8, 8                      # texture map size

    ks = jax.random.split(key, 10)
    verts = jax.random.normal(ks[0], (V, 3), jnp.float32)
    vn = jax.random.normal(ks[1], (V, 3), jnp.float32)
    verts_normals = vn / jnp.linalg.norm(vn, axis=-1, keepdims=True)
    faces = jax.random.randint(ks[2], (F, 3), 0, V)
    verts_uvs = jax.random.uniform(ks[3], (Vt, 2), jnp.float32)
    faces_uvs = jax.random.randint(ks[4], (F, 3), 0, Vt)
    texture_maps = jax.random.uniform(ks[5], (N, Ht, Wt, 3), jnp.float32)

    pix_to_face = jax.random.randint(ks[6], (N, H, W, K), -1, F)  # -1 = background
    b = jax.random.uniform(ks[7], (N, H, W, K, 3), jnp.float32) + 1e-3
    bary_coords = b / b.sum(-1, keepdims=True)
    zbuf = jax.random.uniform(ks[8], (N, H, W, K), jnp.float32, 1.0, 50.0)
    dists = jax.random.uniform(ks[9], (N, H, W, K), jnp.float32, -2e-4, 2e-4)

    # Deterministic "module parameters" (PointLights / Materials / camera /
    # BlendParams defaults; materials colors = 1 so combined = light colors).
    light_loc = jnp.tile(jnp.array([[0.0, 1.0, 0.0]], jnp.float32), (N, 1))
    cam_pos = jnp.tile(jnp.array([[0.0, 0.0, 2.7]], jnp.float32), (N, 1))
    amb = jnp.tile(jnp.array([[0.5, 0.5, 0.5]], jnp.float32), (N, 1))
    dif = jnp.tile(jnp.array([[0.3, 0.3, 0.3]], jnp.float32), (N, 1))
    spc = jnp.tile(jnp.array([[0.2, 0.2, 0.2]], jnp.float32), (N, 1))
    shininess = 64.0
    bg = jnp.array([1.0, 1.0, 1.0], jnp.float32)
    sigma, gamma, znear, zfar = 1e-4, 1e-4, 1.0, 100.0

    params = jnp.concatenate([
        light_loc, cam_pos, amb, dif, spc,
        jnp.full((N, 1), shininess, jnp.float32),
        jnp.tile(bg[None], (N, 1)),
        jnp.full((N, 1), sigma, jnp.float32),
        jnp.full((N, 1), gamma, jnp.float32),
        jnp.full((N, 1), znear, jnp.float32),
        jnp.full((N, 1), zfar, jnp.float32),
        jnp.zeros((N, 1), jnp.float32),
    ], axis=1)                                           # (N, 24)

    fwd = jax.jit(textured_phong_forward)
    images = fwd(pix_to_face, bary_coords, zbuf, dists,
                 verts, faces, verts_normals, verts_uvs, faces_uvs,
                 texture_maps, params)
    images = jax.block_until_ready(images)

    ref = reference_forward(pix_to_face, bary_coords, zbuf, dists,
                            verts, faces, verts_normals, verts_uvs, faces_uvs,
                            texture_maps, light_loc, cam_pos, amb, dif, spc,
                            shininess, bg, sigma, gamma, znear, zfar)

    assert images.shape == (N, H, W, 4)
    assert bool(jnp.all(jnp.isfinite(images)))
    assert bool(jnp.allclose(images, ref, rtol=1e-3, atol=1e-3))
    print("KERNEL_OK")
</pallas_src>

<mosaic_0001>
module attributes {stable_mosaic.version = 11 : i64} {
  func.func @geom_kernel(%arg0: i32, %arg1: i32, %arg2: memref<2x24xf32, #tpu.memory_space<smem>>, %arg3: memref<24x1x8x128xf32, #tpu.memory_space<vmem>>, %arg4: memref<1x3x8x128xf32, #tpu.memory_space<vmem>>, %arg5: memref<1x2x8x128xf32, #tpu.memory_space<vmem>>, %arg6: memref<1x8x128xf32, #tpu.memory_space<vmem>>, %arg7: memref<1x8x128xf32, #tpu.memory_space<vmem>>) attributes {dimension_semantics = [#tpu.dimension_semantics<parallel>, #tpu.dimension_semantics<parallel>], iteration_bounds = array<i64: 2, 4>, scalar_prefetch = 1 : i64, scratch_operands = 0 : i64, tpu.core_type = #tpu.core_type<tc>, window_params = [{transform_indices = @transform_0, window_bounds = array<i64: 24, 1, 8, 128>}, {transform_indices = @transform_1, window_bounds = array<i64: 1, 3, 8, 128>}, {transform_indices = @transform_2, window_bounds = array<i64: 1, 2, 8, 128>}, {transform_indices = @transform_3, window_bounds = array<i64: 1, 8, 128>}, {transform_indices = @transform_4, window_bounds = array<i64: 1, 8, 128>}]} {
    %0 = arith.index_cast %arg0 : i32 to index
    %c0 = arith.constant 0 : index
    %1 = memref.load %arg2[%0, %c0] : memref<2x24xf32, #tpu.memory_space<smem>>
    %2 = arith.index_cast %arg0 : i32 to index
    %c1 = arith.constant 1 : index
    %3 = memref.load %arg2[%2, %c1] : memref<2x24xf32, #tpu.memory_space<smem>>
    %4 = arith.index_cast %arg0 : i32 to index
    %c2 = arith.constant 2 : index
    %5 = memref.load %arg2[%4, %c2] : memref<2x24xf32, #tpu.memory_space<smem>>
    %6 = arith.index_cast %arg0 : i32 to index
    %c3 = arith.constant 3 : index
    %7 = memref.load %arg2[%6, %c3] : memref<2x24xf32, #tpu.memory_space<smem>>
    %8 = arith.index_cast %arg0 : i32 to index
    %c4 = arith.constant 4 : index
    %9 = memref.load %arg2[%8, %c4] : memref<2x24xf32, #tpu.memory_space<smem>>
    %10 = arith.index_cast %arg0 : i32 to index
    %c5 = arith.constant 5 : index
    %11 = memref.load %arg2[%10, %c5] : memref<2x24xf32, #tpu.memory_space<smem>>
    %12 = arith.index_cast %arg0 : i32 to index
    %c15 = arith.constant 15 : index
    %13 = memref.load %arg2[%12, %c15] : memref<2x24xf32, #tpu.memory_space<smem>>
    %c0_0 = arith.constant 0 : index
    %c0_1 = arith.constant 0 : index
    %c0_2 = arith.constant 0 : index
    %c0_3 = arith.constant 0 : index
    %14 = vector.load %arg4[%c0_0, %c0_1, %c0_2, %c0_3] : memref<1x3x8x128xf32, #tpu.memory_space<vmem>>, vector<1x1x8x128xf32>
    %15 = vector.shape_cast %14 : vector<1x1x8x128xf32> to vector<8x128xf32>
    %c0_4 = arith.constant 0 : index
    %c1_5 = arith.constant 1 : index
    %c0_6 = arith.constant 0 : index
    %c0_7 = arith.constant 0 : index
    %16 = vector.load %arg4[%c0_4, %c1_5, %c0_6, %c0_7] : memref<1x3x8x128xf32, #tpu.memory_space<vmem>>, vector<1x1x8x128xf32>
    %17 = vector.shape_cast %16 : vector<1x1x8x128xf32> to vector<8x128xf32>
    %c0_8 = arith.constant 0 : index
    %c2_9 = arith.constant 2 : index
    %c0_10 = arith.constant 0 : index
    %c0_11 = arith.constant 0 : index
    %18 = vector.load %arg4[%c0_8, %c2_9, %c0_10, %c0_11] : memref<1x3x8x128xf32, #tpu.memory_space<vmem>>, vector<1x1x8x128xf32>
    %19 = vector.shape_cast %18 : vector<1x1x8x128xf32> to vector<8x128xf32>
    %c0_12 = arith.constant 0 : index
    %c0_13 = arith.constant 0 : index
    %c0_14 = arith.constant 0 : index
    %c0_15 = arith.constant 0 : index
    %20 = vector.load %arg3[%c0_12, %c0_13, %c0_14, %c0_15] : memref<24x1x8x128xf32, #tpu.memory_space<vmem>>, vector<1x1x8x128xf32>
    %21 = vector.shape_cast %20 : vector<1x1x8x128xf32> to vector<8x128xf32>
    %22 = arith.mulf %15, %21 : vector<8x128xf32>
    %c8 = arith.constant 8 : index
    %c0_16 = arith.constant 0 : index
    %c0_17 = arith.constant 0 : index
    %c0_18 = arith.constant 0 : index
    %23 = vector.load %arg3[%c8, %c0_16, %c0_17, %c0_18] : memref<24x1x8x128xf32, #tpu.memory_space<vmem>>, vector<1x1x8x128xf32>
    %24 = vector.shape_cast %23 : vector<1x1x8x128xf32> to vector<8x128xf32>
    %25 = arith.mulf %17, %24 : vector<8x128xf32>
    %26 = arith.addf %22, %25 : vector<8x128xf32>
    %c16 = arith.constant 16 : index
    %c0_19 = arith.constant 0 : index
    %c0_20 = arith.constant 0 : index
    %c0_21 = arith.constant 0 : index
    %27 = vector.load %arg3[%c16, %c0_19, %c0_20, %c0_21] : memref<24x1x8x128xf32, #tpu.memory_space<vmem>>, vector<1x1x8x128xf32>
    %28 = vector.shape_cast %27 : vector<1x1x8x128xf32> to vector<8x128xf32>
    %29 = arith.mulf %19, %28 : vector<8x128xf32>
    %30 = arith.addf %26, %29 : vector<8x128xf32>
    %c1_22 = arith.constant 1 : index
    %c0_23 = arith.constant 0 : index
    %c0_24 = arith.constant 0 : index
    %c0_25 = arith.constant 0 : index
    %31 = vector.load %arg3[%c1_22, %c0_23, %c0_24, %c0_25] : memref<24x1x8x128xf32, #tpu.memory_space<vmem>>, vector<1x1x8x128xf32>
    %32 = vector.shape_cast %31 : vector<1x1x8x128xf32> to vector<8x128xf32>
    %33 = arith.mulf %15, %32 : vector<8x128xf32>
    %c9 = arith.constant 9 : index
    %c0_26 = arith.constant 0 : index
    %c0_27 = arith.constant 0 : index
    %c0_28 = arith.constant 0 : index
    %34 = vector.load %arg3[%c9, %c0_26, %c0_27, %c0_28] : memref<24x1x8x128xf32, #tpu.memory_space<vmem>>, vector<1x1x8x128xf32>
    %35 = vector.shape_cast %34 : vector<1x1x8x128xf32> to vector<8x128xf32>
    %36 = arith.mulf %17, %35 : vector<8x128xf32>
    %37 = arith.addf %33, %36 : vector<8x128xf32>
    %c17 = arith.constant 17 : index
    %c0_29 = arith.constant 0 : index
    %c0_30 = arith.constant 0 : index
    %c0_31 = arith.constant 0 : index
    %38 = vector.load %arg3[%c17, %c0_29, %c0_30, %c0_31] : memref<24x1x8x128xf32, #tpu.memory_space<vmem>>, vector<1x1x8x128xf32>
    %39 = vector.shape_cast %38 : vector<1x1x8x128xf32> to vector<8x128xf32>
    %40 = arith.mulf %19, %39 : vector<8x128xf32>
    %41 = arith.addf %37, %40 : vector<8x128xf32>
    %c2_32 = arith.constant 2 : index
    %c0_33 = arith.constant 0 : index
    %c0_34 = arith.constant 0 : index
    %c0_35 = arith.constant 0 : index
    %42 = vector.load %arg3[%c2_32, %c0_33, %c0_34, %c0_35] : memref<24x1x8x128xf32, #tpu.memory_space<vmem>>, vector<1x1x8x128xf32>
    %43 = vector.shape_cast %42 : vector<1x1x8x128xf32> to vector<8x128xf32>
    %44 = arith.mulf %15, %43 : vector<8x128xf32>
    %c10 = arith.constant 10 : index
    %c0_36 = arith.constant 0 : index
    %c0_37 = arith.constant 0 : index
    %c0_38 = arith.constant 0 : index
    %45 = vector.load %arg3[%c10, %c0_36, %c0_37, %c0_38] : memref<24x1x8x128xf32, #tpu.memory_space<vmem>>, vector<1x1x8x128xf32>
    %46 = vector.shape_cast %45 : vector<1x1x8x128xf32> to vector<8x128xf32>
    %47 = arith.mulf %17, %46 : vector<8x128xf32>
    %48 = arith.addf %44, %47 : vector<8x128xf32>
    %c18 = arith.constant 18 : index
    %c0_39 = arith.constant 0 : index
    %c0_40 = arith.constant 0 : index
    %c0_41 = arith.constant 0 : index
    %49 = vector.load %arg3[%c18, %c0_39, %c0_40, %c0_41] : memref<24x1x8x128xf32, #tpu.memory_space<vmem>>, vector<1x1x8x128xf32>
    %50 = vector.shape_cast %49 : vector<1x1x8x128xf32> to vector<8x128xf32>
    %51 = arith.mulf %19, %50 : vector<8x128xf32>
    %52 = arith.addf %48, %51 : vector<8x128xf32>
    %c3_42 = arith.constant 3 : index
    %c0_43 = arith.constant 0 : index
    %c0_44 = arith.constant 0 : index
    %c0_45 = arith.constant 0 : index
    %53 = vector.load %arg3[%c3_42, %c0_43, %c0_44, %c0_45] : memref<24x1x8x128xf32, #tpu.memory_space<vmem>>, vector<1x1x8x128xf32>
    %54 = vector.shape_cast %53 : vector<1x1x8x128xf32> to vector<8x128xf32>
    %55 = arith.mulf %15, %54 : vector<8x128xf32>
    %c11 = arith.constant 11 : index
    %c0_46 = arith.constant 0 : index
    %c0_47 = arith.constant 0 : index
    %c0_48 = arith.constant 0 : index
    %56 = vector.load %arg3[%c11, %c0_46, %c0_47, %c0_48] : memref<24x1x8x128xf32, #tpu.memory_space<vmem>>, vector<1x1x8x128xf32>
    %57 = vector.shape_cast %56 : vector<1x1x8x128xf32> to vector<8x128xf32>
    %58 = arith.mulf %17, %57 : vector<8x128xf32>
    %59 = arith.addf %55, %58 : vector<8x128xf32>
    %c19 = arith.constant 19 : index
    %c0_49 = arith.constant 0 : index
    %c0_50 = arith.constant 0 : index
    %c0_51 = arith.constant 0 : index
    %60 = vector.load %arg3[%c19, %c0_49, %c0_50, %c0_51] : memref<24x1x8x128xf32, #tpu.memory_space<vmem>>, vector<1x1x8x128xf32>
    %61 = vector.shape_cast %60 : vector<1x1x8x128xf32> to vector<8x128xf32>
    %62 = arith.mulf %19, %61 : vector<8x128xf32>
    %63 = arith.addf %59, %62 : vector<8x128xf32>
    %c4_52 = arith.constant 4 : index
    %c0_53 = arith.constant 0 : index
    %c0_54 = arith.constant 0 : index
    %c0_55 = arith.constant 0 : index
    %64 = vector.load %arg3[%c4_52, %c0_53, %c0_54, %c0_55] : memref<24x1x8x128xf32, #tpu.memory_space<vmem>>, vector<1x1x8x128xf32>
    %65 = vector.shape_cast %64 : vector<1x1x8x128xf32> to vector<8x128xf32>
    %66 = arith.mulf %15, %65 : vector<8x128xf32>
    %c12 = arith.constant 12 : index
    %c0_56 = arith.constant 0 : index
    %c0_57 = arith.constant 0 : index
    %c0_58 = arith.constant 0 : index
    %67 = vector.load %arg3[%c12, %c0_56, %c0_57, %c0_58] : memref<24x1x8x128xf32, #tpu.memory_space<vmem>>, vector<1x1x8x128xf32>
    %68 = vector.shape_cast %67 : vector<1x1x8x128xf32> to vector<8x128xf32>
    %69 = arith.mulf %17, %68 : vector<8x128xf32>
    %70 = arith.addf %66, %69 : vector<8x128xf32>
    %c20 = arith.constant 20 : index
    %c0_59 = arith.constant 0 : index
    %c0_60 = arith.constant 0 : index
    %c0_61 = arith.constant 0 : index
    %71 = vector.load %arg3[%c20, %c0_59, %c0_60, %c0_61] : memref<24x1x8x128xf32, #tpu.memory_space<vmem>>, vector<1x1x8x128xf32>
    %72 = vector.shape_cast %71 : vector<1x1x8x128xf32> to vector<8x128xf32>
    %73 = arith.mulf %19, %72 : vector<8x128xf32>
    %74 = arith.addf %70, %73 : vector<8x128xf32>
    %c5_62 = arith.constant 5 : index
    %c0_63 = arith.constant 0 : index
    %c0_64 = arith.constant 0 : index
    %c0_65 = arith.constant 0 : index
    %75 = vector.load %arg3[%c5_62, %c0_63, %c0_64, %c0_65] : memref<24x1x8x128xf32, #tpu.memory_space<vmem>>, vector<1x1x8x128xf32>
    %76 = vector.shape_cast %75 : vector<1x1x8x128xf32> to vector<8x128xf32>
    %77 = arith.mulf %15, %76 : vector<8x128xf32>
    %c13 = arith.constant 13 : index
    %c0_66 = arith.constant 0 : index
    %c0_67 = arith.constant 0 : index
    %c0_68 = arith.constant 0 : index
    %78 = vector.load %arg3[%c13, %c0_66, %c0_67, %c0_68] : memref<24x1x8x128xf32, #tpu.memory_space<vmem>>, vector<1x1x8x128xf32>
    %79 = vector.shape_cast %78 : vector<1x1x8x128xf32> to vector<8x128xf32>
    %80 = arith.mulf %17, %79 : vector<8x128xf32>
    %81 = arith.addf %77, %80 : vector<8x128xf32>
    %c21 = arith.constant 21 : index
    %c0_69 = arith.constant 0 : index
    %c0_70 = arith.constant 0 : index
    %c0_71 = arith.constant 0 : index
    %82 = vector.load %arg3[%c21, %c0_69, %c0_70, %c0_71] : memref<24x1x8x128xf32, #tpu.memory_space<vmem>>, vector<1x1x8x128xf32>
    %83 = vector.shape_cast %82 : vector<1x1x8x128xf32> to vector<8x128xf32>
    %84 = arith.mulf %19, %83 : vector<8x128xf32>
    %85 = arith.addf %81, %84 : vector<8x128xf32>
    %c6 = arith.constant 6 : index
    %c0_72 = arith.constant 0 : index
    %c0_73 = arith.constant 0 : index
    %c0_74 = arith.constant 0 : index
    %86 = vector.load %arg3[%c6, %c0_72, %c0_73, %c0_74] : memref<24x1x8x128xf32, #tpu.memory_space<vmem>>, vector<1x1x8x128xf32>
    %87 = vector.shape_cast %86 : vector<1x1x8x128xf32> to vector<8x128xf32>
    %88 = arith.mulf %15, %87 : vector<8x128xf32>
    %c14 = arith.constant 14 : index
    %c0_75 = arith.constant 0 : index
    %c0_76 = arith.constant 0 : index
    %c0_77 = arith.constant 0 : index
    %89 = vector.load %arg3[%c14, %c0_75, %c0_76, %c0_77] : memref<24x1x8x128xf32, #tpu.memory_space<vmem>>, vector<1x1x8x128xf32>
    %90 = vector.shape_cast %89 : vector<1x1x8x128xf32> to vector<8x128xf32>
    %91 = arith.mulf %17, %90 : vector<8x128xf32>
    %92 = arith.addf %88, %91 : vector<8x128xf32>
    %c22 = arith.constant 22 : index
    %c0_78 = arith.constant 0 : index
    %c0_79 = arith.constant 0 : index
    %c0_80 = arith.constant 0 : index
    %93 = vector.load %arg3[%c22, %c0_78, %c0_79, %c0_80] : memref<24x1x8x128xf32, #tpu.memory_space<vmem>>, vector<1x1x8x128xf32>
    %94 = vector.shape_cast %93 : vector<1x1x8x128xf32> to vector<8x128xf32>
    %95 = arith.mulf %19, %94 : vector<8x128xf32>
    %96 = arith.addf %92, %95 : vector<8x128xf32>
    %c0_81 = arith.constant 0 : index
    %c0_82 = arith.constant 0 : index
    %c0_83 = arith.constant 0 : index
    %c0_84 = arith.constant 0 : index
    %97 = vector.load %arg5[%c0_81, %c0_82, %c0_83, %c0_84] : memref<1x2x8x128xf32, #tpu.memory_space<vmem>>, vector<1x1x8x128xf32>
    %98 = vector.shape_cast %97 : vector<1x1x8x128xf32> to vector<8x128xf32>
    %99 = vector.shape_cast %96 : vector<8x128xf32> to vector<1x1x8x128xf32>
    tpu.vector_store %arg5[%c0_81, %c0_82, %c0_83, %c0_84], %99 {strides = array<i32>} : memref<1x2x8x128xf32, #tpu.memory_space<vmem>>, vector<1x1x8x128xf32>,
    %c7 = arith.constant 7 : index
    %c0_85 = arith.constant 0 : index
    %c0_86 = arith.constant 0 : index
    %c0_87 = arith.constant 0 : index
    %100 = vector.load %arg3[%c7, %c0_85, %c0_86, %c0_87] : memref<24x1x8x128xf32, #tpu.memory_space<vmem>>, vector<1x1x8x128xf32>
    %101 = vector.shape_cast %100 : vector<1x1x8x128xf32> to vector<8x128xf32>
    %102 = arith.mulf %15, %101 : vector<8x128xf32>
    %c15_88 = arith.constant 15 : index
    %c0_89 = arith.constant 0 : index
    %c0_90 = arith.constant 0 : index
    %c0_91 = arith.constant 0 : index
    %103 = vector.load %arg3[%c15_88, %c0_89, %c0_90, %c0_91] : memref<24x1x8x128xf32, #tpu.memory_space<vmem>>, vector<1x1x8x128xf32>
    %104 = vector.shape_cast %103 : vector<1x1x8x128xf32> to vector<8x128xf32>
    %105 = arith.mulf %17, %104 : vector<8x128xf32>
    %106 = arith.addf %102, %105 : vector<8x128xf32>
    %c23 = arith.constant 23 : index
    %c0_92 = arith.constant 0 : index
    %c0_93 = arith.constant 0 : index
    %c0_94 = arith.constant 0 : index
    %107 = vector.load %arg3[%c23, %c0_92, %c0_93, %c0_94] : memref<24x1x8x128xf32, #tpu.memory_space<vmem>>, vector<1x1x8x128xf32>
    %108 = vector.shape_cast %107 : vector<1x1x8x128xf32> to vector<8x128xf32>
    %109 = arith.mulf %19, %108 : vector<8x128xf32>
    %110 = arith.addf %106, %109 : vector<8x128xf32>
    %c0_95 = arith.constant 0 : index
    %c1_96 = arith.constant 1 : index
    %c0_97 = arith.constant 0 : index
    %c0_98 = arith.constant 0 : index
    %111 = vector.load %arg5[%c0_95, %c1_96, %c0_97, %c0_98] : memref<1x2x8x128xf32, #tpu.memory_space<vmem>>, vector<1x1x8x128xf32>
    %112 = vector.shape_cast %111 : vector<1x1x8x128xf32> to vector<8x128xf32>
    %113 = vector.shape_cast %110 : vector<8x128xf32> to vector<1x1x8x128xf32>
    tpu.vector_store %arg5[%c0_95, %c1_96, %c0_97, %c0_98], %113 {strides = array<i32>} : memref<1x2x8x128xf32, #tpu.memory_space<vmem>>, vector<1x1x8x128xf32>,
    %114 = arith.mulf %63, %63 : vector<8x128xf32>
    %115 = arith.mulf %74, %74 : vector<8x128xf32>
    %116 = arith.addf %114, %115 : vector<8x128xf32>
    %117 = arith.mulf %85, %85 : vector<8x128xf32>
    %118 = arith.addf %116, %117 : vector<8x128xf32>
    %cst = arith.constant 9.99999996E-13 : f32
    %119 = vector.broadcast %cst : f32 to vector<8x128xf32>
    %120 = arith.maximumf %118, %119 : vector<8x128xf32>
    %121 = math.rsqrt %120 : vector<8x128xf32>
    %122 = arith.mulf %63, %121 : vector<8x128xf32>
    %123 = arith.mulf %74, %121 : vector<8x128xf32>
    %124 = arith.mulf %85, %121 : vector<8x128xf32>
    %125 = vector.broadcast %1 : f32 to vector<8x128xf32>
    %126 = arith.subf %125, %30 : vector<8x128xf32>
    %127 = vector.broadcast %3 : f32 to vector<8x128xf32>
    %128 = arith.subf %127, %41 : vector<8x128xf32>
    %129 = vector.broadcast %5 : f32 to vector<8x128xf32>
    %130 = arith.subf %129, %52 : vector<8x128xf32>
    %131 = arith.mulf %126, %126 : vector<8x128xf32>
    %132 = arith.mulf %128, %128 : vector<8x128xf32>
    %133 = arith.addf %131, %132 : vector<8x128xf32>
    %134 = arith.mulf %130, %130 : vector<8x128xf32>
    %135 = arith.addf %133, %134 : vector<8x128xf32>
    %cst_99 = arith.constant 9.99999996E-13 : f32
    %136 = vector.broadcast %cst_99 : f32 to vector<8x128xf32>
    %137 = arith.maximumf %135, %136 : vector<8x128xf32>
    %138 = math.rsqrt %137 : vector<8x128xf32>
    %139 = arith.mulf %126, %138 : vector<8x128xf32>
    %140 = arith.mulf %128, %138 : vector<8x128xf32>
    %141 = arith.mulf %130, %138 : vector<8x128xf32>
    %142 = arith.mulf %122, %139 : vector<8x128xf32>
    %143 = arith.mulf %123, %140 : vector<8x128xf32>
    %144 = arith.addf %142, %143 : vector<8x128xf32>
    %145 = arith.mulf %124, %141 : vector<8x128xf32>
    %146 = arith.addf %144, %145 : vector<8x128xf32>
    %cst_100 = arith.constant 0.000000e+00 : f32
    %147 = vector.broadcast %cst_100 : f32 to vector<8x128xf32>
    %148 = arith.maximumf %146, %147 : vector<8x128xf32>
    %c0_101 = arith.constant 0 : index
    %c0_102 = arith.constant 0 : index
    %c0_103 = arith.constant 0 : index
    %149 = vector.load %arg6[%c0_101, %c0_102, %c0_103] : memref<1x8x128xf32, #tpu.memory_space<vmem>>, vector<1x8x128xf32>
    %150 = vector.shape_cast %149 : vector<1x8x128xf32> to vector<8x128xf32>
    %151 = vector.shape_cast %148 : vector<8x128xf32> to vector<1x8x128xf32>
    tpu.vector_store %arg6[%c0_101, %c0_102, %c0_103], %151 {strides = array<i32>} : memref<1x8x128xf32, #tpu.memory_space<vmem>>, vector<1x8x128xf32>,
    %cst_104 = arith.constant 2.000000e+00 : f32
    %152 = vector.broadcast %cst_104 : f32 to vector<8x128xf32>
    %153 = arith.mulf %152, %146 : vector<8x128xf32>
    %154 = arith.mulf %153, %122 : vector<8x128xf32>
    %155 = arith.subf %154, %139 : vector<8x128xf32>
    %cst_105 = arith.constant 2.000000e+00 : f32
    %156 = vector.broadcast %cst_105 : f32 to vector<8x128xf32>
    %157 = arith.mulf %156, %146 : vector<8x128xf32>
    %158 = arith.mulf %157, %123 : vector<8x128xf32>
    %159 = arith.subf %158, %140 : vector<8x128xf32>
    %cst_106 = arith.constant 2.000000e+00 : f32
    %160 = vector.broadcast %cst_106 : f32 to vector<8x128xf32>
    %161 = arith.mulf %160, %146 : vector<8x128xf32>
    %162 = arith.mulf %161, %124 : vector<8x128xf32>
    %163 = arith.subf %162, %141 : vector<8x128xf32>
    %164 = vector.broadcast %7 : f32 to vector<8x128xf32>
    %165 = arith.subf %164, %30 : vector<8x128xf32>
    %166 = vector.broadcast %9 : f32 to vector<8x128xf32>
    %167 = arith.subf %166, %41 : vector<8x128xf32>
    %168 = vector.broadcast %11 : f32 to vector<8x128xf32>
    %169 = arith.subf %168, %52 : vector<8x128xf32>
    %170 = arith.mulf %165, %165 : vector<8x128xf32>
    %171 = arith.mulf %167, %167 : vector<8x128xf32>
    %172 = arith.addf %170, %171 : vector<8x128xf32>
    %173 = arith.mulf %169, %169 : vector<8x128xf32>
    %174 = arith.addf %172, %173 : vector<8x128xf32>
    %cst_107 = arith.constant 9.99999996E-13 : f32
    %175 = vector.broadcast %cst_107 : f32 to vector<8x128xf32>
    %176 = arith.maximumf %174, %175 : vector<8x128xf32>
    %177 = math.rsqrt %176 : vector<8x128xf32>
    %178 = arith.mulf %155, %165 : vector<8x128xf32>
    %179 = arith.mulf %159, %167 : vector<8x128xf32>
    %180 = arith.addf %178, %179 : vector<8x128xf32>
    %181 = arith.mulf %163, %169 : vector<8x128xf32>
    %182 = arith.addf %180, %181 : vector<8x128xf32>
    %183 = arith.mulf %182, %177 : vector<8x128xf32>
    %cst_108 = arith.constant 0.000000e+00 : f32
    %184 = vector.broadcast %cst_108 : f32 to vector<8x128xf32>
    %185 = arith.maximumf %183, %184 : vector<8x128xf32>
    %cst_109 = arith.constant 0.000000e+00 : f32
    %186 = vector.broadcast %cst_109 : f32 to vector<8x128xf32>
    %187 = arith.cmpf ogt, %146, %186 : vector<8x128xf32>
    %cst_110 = arith.constant 0.000000e+00 : f32
    %188 = vector.broadcast %cst_110 : f32 to vector<8x128xf32>
    %189 = arith.select %187, %185, %188 : vector<8x128xi1>, vector<8x128xf32>
    %cst_111 = arith.constant 0.000000e+00 : f32
    %190 = vector.broadcast %cst_111 : f32 to vector<8x128xf32>
    %191 = arith.cmpf ogt, %189, %190 : vector<8x128xf32>
    %cst_112 = arith.constant 1.000000e-30 : f32
    %192 = vector.broadcast %cst_112 : f32 to vector<8x128xf32>
    %193 = arith.maximumf %189, %192 : vector<8x128xf32>
    %194 = math.log %193 : vector<8x128xf32>
    %195 = vector.broadcast %13 : f32 to vector<8x128xf32>
    %196 = arith.mulf %195, %194 : vector<8x128xf32>
    %197 = math.exp %196 : vector<8x128xf32>
    %cst_113 = arith.constant 0.000000e+00 : f32
    %198 = vector.broadcast %cst_113 : f32 to vector<8x128xf32>
    %199 = arith.select %191, %197, %198 : vector<8x128xi1>, vector<8x128xf32>
    %c0_114 = arith.constant 0 : index
    %c0_115 = arith.constant 0 : index
    %c0_116 = arith.constant 0 : index
    %200 = vector.load %arg7[%c0_114, %c0_115, %c0_116] : memref<1x8x128xf32, #tpu.memory_space<vmem>>, vector<1x8x128xf32>
    %201 = vector.shape_cast %200 : vector<1x8x128xf32> to vector<8x128xf32>
    %202 = vector.shape_cast %199 : vector<8x128xf32> to vector<1x8x128xf32>
    tpu.vector_store %arg7[%c0_114, %c0_115, %c0_116], %202 {strides = array<i32>} : memref<1x8x128xf32, #tpu.memory_space<vmem>>, vector<1x8x128xf32>,
    return
  }
  func.func @transform_0(%arg0: i32, %arg1: i32, %arg2: memref<2x24xf32, #tpu.memory_space<smem>>) -> (i32, i32, i32, i32) {
    %c0_i32 = arith.constant 0 : i32
    %c0_i32_0 = arith.constant 0 : i32
    %c0_i32_1 = arith.constant 0 : i32
    return %c0_i32, %arg0, %arg1, %c0_i32_0 : i32, i32, i32, i32
  }
  func.func @transform_1(%arg0: i32, %arg1: i32, %arg2: memref<2x24xf32, #tpu.memory_space<smem>>) -> (i32, i32, i32, i32) {
    %c0_i32 = arith.constant 0 : i32
    %c0_i32_0 = arith.constant 0 : i32
    %c0_i32_1 = arith.constant 0 : i32
    return %arg0, %c0_i32, %arg1, %c0_i32_0 : i32, i32, i32, i32
  }
  func.func @transform_2(%arg0: i32, %arg1: i32, %arg2: memref<2x24xf32, #tpu.memory_space<smem>>) -> (i32, i32, i32, i32) {
    %c0_i32 = arith.constant 0 : i32
    %c0_i32_0 = arith.constant 0 : i32
    %c0_i32_1 = arith.constant 0 : i32
    return %arg0, %c0_i32, %arg1, %c0_i32_0 : i32, i32, i32, i32
  }
  func.func @transform_3(%arg0: i32, %arg1: i32, %arg2: memref<2x24xf32, #tpu.memory_space<smem>>) -> (i32, i32, i32) {
    %c0_i32 = arith.constant 0 : i32
    %c0_i32_0 = arith.constant 0 : i32
    return %arg0, %arg1, %c0_i32 : i32, i32, i32
  }
  func.func @transform_4(%arg0: i32, %arg1: i32, %arg2: memref<2x24xf32, #tpu.memory_space<smem>>) -> (i32, i32, i32) {
    %c0_i32 = arith.constant 0 : i32
    %c0_i32_0 = arith.constant 0 : i32
    return %arg0, %arg1, %c0_i32 : i32, i32, i32
  }
}

module attributes {stable_mosaic.version = 11 : i64} {
  func.func @blend_kernel(%arg0: i32, %arg1: i32, %arg2: memref<2x24xf32, #tpu.memory_space<smem>>, %arg3: memref<1x4x3x8x128xf32, #tpu.memory_space<vmem>>, %arg4: memref<1x4x8x128xf32, #tpu.memory_space<vmem>>, %arg5: memref<1x4x8x128xf32, #tpu.memory_space<vmem>>, %arg6: memref<1x4x8x128xf32, #tpu.memory_space<vmem>>, %arg7: memref<1x4x8x128xf32, #tpu.memory_space<vmem>>, %arg8: memref<1x4x8x128xf32, #tpu.memory_space<vmem>>, %arg9: memref<2x4x8x128xf32, #tpu.memory_space<vmem>>) attributes {dimension_semantics = [#tpu.dimension_semantics<parallel>, #tpu.dimension_semantics<parallel>], iteration_bounds = array<i64: 2, 1>, scalar_prefetch = 1 : i64, scratch_operands = 1 : i64, tpu.core_type = #tpu.core_type<tc>, window_params = [{transform_indices = @transform_0, window_bounds = array<i64: 1, 4, 3, 8, 128>}, {transform_indices = @transform_1, window_bounds = array<i64: 1, 4, 8, 128>}, {transform_indices = @transform_2, window_bounds = array<i64: 1, 4, 8, 128>}, {transform_indices = @transform_3, window_bounds = array<i64: 1, 4, 8, 128>}, {transform_indices = @transform_4, window_bounds = array<i64: 1, 4, 8, 128>}, {transform_indices = @transform_5, window_bounds = array<i64: 1, 4, 8, 128>}]} {
    %0 = arith.index_cast %arg0 : i32 to index
    %c6 = arith.constant 6 : index
    %1 = memref.load %arg2[%0, %c6] : memref<2x24xf32, #tpu.memory_space<smem>>
    %2 = arith.index_cast %arg0 : i32 to index
    %c7 = arith.constant 7 : index
    %3 = memref.load %arg2[%2, %c7] : memref<2x24xf32, #tpu.memory_space<smem>>
    %4 = arith.index_cast %arg0 : i32 to index
    %c8 = arith.constant 8 : index
    %5 = memref.load %arg2[%4, %c8] : memref<2x24xf32, #tpu.memory_space<smem>>
    %6 = arith.index_cast %arg0 : i32 to index
    %c9 = arith.constant 9 : index
    %7 = memref.load %arg2[%6, %c9] : memref<2x24xf32, #tpu.memory_space<smem>>
    %8 = arith.index_cast %arg0 : i32 to index
    %c10 = arith.constant 10 : index
    %9 = memref.load %arg2[%8, %c10] : memref<2x24xf32, #tpu.memory_space<smem>>
    %10 = arith.index_cast %arg0 : i32 to index
    %c11 = arith.constant 11 : index
    %11 = memref.load %arg2[%10, %c11] : memref<2x24xf32, #tpu.memory_space<smem>>
    %12 = arith.index_cast %arg0 : i32 to index
    %c12 = arith.constant 12 : index
    %13 = memref.load %arg2[%12, %c12] : memref<2x24xf32, #tpu.memory_space<smem>>
    %14 = arith.index_cast %arg0 : i32 to index
    %c13 = arith.constant 13 : index
    %15 = memref.load %arg2[%14, %c13] : memref<2x24xf32, #tpu.memory_space<smem>>
    %16 = arith.index_cast %arg0 : i32 to index
    %c14 = arith.constant 14 : index
    %17 = memref.load %arg2[%16, %c14] : memref<2x24xf32, #tpu.memory_space<smem>>
    %18 = arith.index_cast %arg0 : i32 to index
    %c16 = arith.constant 16 : index
    %19 = memref.load %arg2[%18, %c16] : memref<2x24xf32, #tpu.memory_space<smem>>
    %20 = arith.index_cast %arg0 : i32 to index
    %c17 = arith.constant 17 : index
    %21 = memref.load %arg2[%20, %c17] : memref<2x24xf32, #tpu.memory_space<smem>>
    %22 = arith.index_cast %arg0 : i32 to index
    %c18 = arith.constant 18 : index
    %23 = memref.load %arg2[%22, %c18] : memref<2x24xf32, #tpu.memory_space<smem>>
    %24 = arith.index_cast %arg0 : i32 to index
    %c19 = arith.constant 19 : index
    %25 = memref.load %arg2[%24, %c19] : memref<2x24xf32, #tpu.memory_space<smem>>
    %26 = arith.index_cast %arg0 : i32 to index
    %c20 = arith.constant 20 : index
    %27 = memref.load %arg2[%26, %c20] : memref<2x24xf32, #tpu.memory_space<smem>>
    %28 = arith.index_cast %arg0 : i32 to index
    %c21 = arith.constant 21 : index
    %29 = memref.load %arg2[%28, %c21] : memref<2x24xf32, #tpu.memory_space<smem>>
    %30 = arith.index_cast %arg0 : i32 to index
    %c22 = arith.constant 22 : index
    %31 = memref.load %arg2[%30, %c22] : memref<2x24xf32, #tpu.memory_space<smem>>
    %cst = arith.constant 1.000000e+00 : f32
    %32 = arith.divf %cst, %25 : f32
    %cst_0 = arith.constant 1.000000e+00 : f32
    %33 = arith.divf %cst_0, %27 : f32
    %34 = arith.subf %31, %29 : f32
    %c0 = arith.constant 0 : index
    %c0_1 = arith.constant 0 : index
    %c0_2 = arith.constant 0 : index
    %c0_3 = arith.constant 0 : index
    %35 = vector.load %arg7[%c0, %c0_1, %c0_2, %c0_3] : memref<1x4x8x128xf32, #tpu.memory_space<vmem>>, vector<1x1x8x128xf32>
    %36 = vector.shape_cast %35 : vector<1x1x8x128xf32> to vector<8x128xf32>
    %37 = vector.broadcast %32 : f32 to vector<8x128xf32>
    %38 = arith.mulf %36, %37 : vector<8x128xf32>
    %39 = math.exp %38 : vector<8x128xf32>
    %cst_4 = arith.constant 1.000000e+00 : f32
    %40 = vector.broadcast %cst_4 : f32 to vector<8x128xf32>
    %41 = arith.addf %40, %39 : vector<8x128xf32>
    %cst_5 = arith.constant 1.000000e+00 : f32
    %42 = vector.broadcast %cst_5 : f32 to vector<8x128xf32>
    %43 = arith.divf %42, %41 : vector<8x128xf32>
    %c0_6 = arith.constant 0 : index
    %c0_7 = arith.constant 0 : index
    %c0_8 = arith.constant 0 : index
    %c0_9 = arith.constant 0 : index
    %44 = vector.load %arg6[%c0_6, %c0_7, %c0_8, %c0_9] : memref<1x4x8x128xf32, #tpu.memory_space<vmem>>, vector<1x1x8x128xf32>
    %45 = vector.shape_cast %44 : vector<1x1x8x128xf32> to vector<8x128xf32>
    %46 = vector.broadcast %31 : f32 to vector<8x128xf32>
    %47 = arith.subf %46, %45 : vector<8x128xf32>
    %48 = vector.broadcast %34 : f32 to vector<8x128xf32>
    %49 = arith.divf %47, %48 : vector<8x128xf32>
    %c0_10 = arith.constant 0 : index
    %c0_11 = arith.constant 0 : index
    %c0_12 = arith.constant 0 : index
    %c0_13 = arith.constant 0 : index
    %50 = vector.load %arg9[%c0_10, %c0_11, %c0_12, %c0_13] : memref<2x4x8x128xf32, #tpu.memory_space<vmem>>, vector<1x1x8x128xf32>
    %51 = vector.shape_cast %50 : vector<1x1x8x128xf32> to vector<8x128xf32>
    %52 = vector.shape_cast %43 : vector<8x128xf32> to vector<1x1x8x128xf32>
    tpu.vector_store %arg9[%c0_10, %c0_11, %c0_12, %c0_13], %52 {strides = array<i32>} : memref<2x4x8x128xf32, #tpu.memory_space<vmem>>, vector<1x1x8x128xf32>,
    %c1 = arith.constant 1 : index
    %c0_14 = arith.constant 0 : index
    %c0_15 = arith.constant 0 : index
    %c0_16 = arith.constant 0 : index
    %53 = vector.load %arg9[%c1, %c0_14, %c0_15, %c0_16] : memref<2x4x8x128xf32, #tpu.memory_space<vmem>>, vector<1x1x8x128xf32>
    %54 = vector.shape_cast %53 : vector<1x1x8x128xf32> to vector<8x128xf32>
    %55 = vector.shape_cast %49 : vector<8x128xf32> to vector<1x1x8x128xf32>
    tpu.vector_store %arg9[%c1, %c0_14, %c0_15, %c0_16], %55 {strides = array<i32>} : memref<2x4x8x128xf32, #tpu.memory_space<vmem>>, vector<1x1x8x128xf32>,
    %cst_17 = arith.constant 1.000000e+00 : f32
    %56 = vector.broadcast %cst_17 : f32 to vector<8x128xf32>
    %57 = arith.subf %56, %43 : vector<8x128xf32>
    %c0_18 = arith.constant 0 : index
    %c1_19 = arith.constant 1 : index
    %c0_20 = arith.constant 0 : index
    %c0_21 = arith.constant 0 : index
    %58 = vector.load %arg7[%c0_18, %c1_19, %c0_20, %c0_21] : memref<1x4x8x128xf32, #tpu.memory_space<vmem>>, vector<1x1x8x128xf32>
    %59 = vector.shape_cast %58 : vector<1x1x8x128xf32> to vector<8x128xf32>
    %60 = vector.broadcast %32 : f32 to vector<8x128xf32>
    %61 = arith.mulf %59, %60 : vector<8x128xf32>
    %62 = math.exp %61 : vector<8x128xf32>
    %cst_22 = arith.constant 1.000000e+00 : f32
    %63 = vector.broadcast %cst_22 : f32 to vector<8x128xf32>
    %64 = arith.addf %63, %62 : vector<8x128xf32>
    %cst_23 = arith.constant 1.000000e+00 : f32
    %65 = vector.broadcast %cst_23 : f32 to vector<8x128xf32>
    %66 = arith.divf %65, %64 : vector<8x128xf32>
    %c0_24 = arith.constant 0 : index
    %c1_25 = arith.constant 1 : index
    %c0_26 = arith.constant 0 : index
    %c0_27 = arith.constant 0 : index
    %67 = vector.load %arg6[%c0_24, %c1_25, %c0_26, %c0_27] : memref<1x4x8x128xf32, #tpu.memory_space<vmem>>, vector<1x1x8x128xf32>
    %68 = vector.shape_cast %67 : vector<1x1x8x128xf32> to vector<8x128xf32>
    %69 = vector.broadcast %31 : f32 to vector<8x128xf32>
    %70 = arith.subf %69, %68 : vector<8x128xf32>
    %71 = vector.broadcast %34 : f32 to vector<8x128xf32>
    %72 = arith.divf %70, %71 : vector<8x128xf32>
    %c0_28 = arith.constant 0 : index
    %c1_29 = arith.constant 1 : index
    %c0_30 = arith.constant 0 : index
    %c0_31 = arith.constant 0 : index
    %73 = vector.load %arg9[%c0_28, %c1_29, %c0_30, %c0_31] : memref<2x4x8x128xf32, #tpu.memory_space<vmem>>, vector<1x1x8x128xf32>
    %74 = vector.shape_cast %73 : vector<1x1x8x128xf32> to vector<8x128xf32>
    %75 = vector.shape_cast %66 : vector<8x128xf32> to vector<1x1x8x128xf32>
    tpu.vector_store %arg9[%c0_28, %c1_29, %c0_30, %c0_31], %75 {strides = array<i32>} : memref<2x4x8x128xf32, #tpu.memory_space<vmem>>, vector<1x1x8x128xf32>,
    %c1_32 = arith.constant 1 : index
    %c1_33 = arith.constant 1 : index
    %c0_34 = arith.constant 0 : index
    %c0_35 = arith.constant 0 : index
    %76 = vector.load %arg9[%c1_32, %c1_33, %c0_34, %c0_35] : memref<2x4x8x128xf32, #tpu.memory_space<vmem>>, vector<1x1x8x128xf32>
    %77 = vector.shape_cast %76 : vector<1x1x8x128xf32> to vector<8x128xf32>
    %78 = vector.shape_cast %72 : vector<8x128xf32> to vector<1x1x8x128xf32>
    tpu.vector_store %arg9[%c1_32, %c1_33, %c0_34, %c0_35], %78 {strides = array<i32>} : memref<2x4x8x128xf32, #tpu.memory_space<vmem>>, vector<1x1x8x128xf32>,
    %cst_36 = arith.constant 1.000000e+00 : f32
    %79 = vector.broadcast %cst_36 : f32 to vector<8x128xf32>
    %80 = arith.subf %79, %66 : vector<8x128xf32>
    %81 = arith.mulf %57, %80 : vector<8x128xf32>
    %82 = arith.maximumf %49, %72 : vector<8x128xf32>
    %c0_37 = arith.constant 0 : index
    %c2 = arith.constant 2 : index
    %c0_38 = arith.constant 0 : index
    %c0_39 = arith.constant 0 : index
    %83 = vector.load %arg7[%c0_37, %c2, %c0_38, %c0_39] : memref<1x4x8x128xf32, #tpu.memory_space<vmem>>, vector<1x1x8x128xf32>
    %84 = vector.shape_cast %83 : vector<1x1x8x128xf32> to vector<8x128xf32>
    %85 = vector.broadcast %32 : f32 to vector<8x128xf32>
    %86 = arith.mulf %84, %85 : vector<8x128xf32>
    %87 = math.exp %86 : vector<8x128xf32>
    %cst_40 = arith.constant 1.000000e+00 : f32
    %88 = vector.broadcast %cst_40 : f32 to vector<8x128xf32>
    %89 = arith.addf %88, %87 : vector<8x128xf32>
    %cst_41 = arith.constant 1.000000e+00 : f32
    %90 = vector.broadcast %cst_41 : f32 to vector<8x128xf32>
    %91 = arith.divf %90, %89 : vector<8x128xf32>
    %c0_42 = arith.constant 0 : index
    %c2_43 = arith.constant 2 : index
    %c0_44 = arith.constant 0 : index
    %c0_45 = arith.constant 0 : index
    %92 = vector.load %arg6[%c0_42, %c2_43, %c0_44, %c0_45] : memref<1x4x8x128xf32, #tpu.memory_space<vmem>>, vector<1x1x8x128xf32>
    %93 = vector.shape_cast %92 : vector<1x1x8x128xf32> to vector<8x128xf32>
    %94 = vector.broadcast %31 : f32 to vector<8x128xf32>
    %95 = arith.subf %94, %93 : vector<8x128xf32>
    %96 = vector.broadcast %34 : f32 to vector<8x128xf32>
    %97 = arith.divf %95, %96 : vector<8x128xf32>
    %c0_46 = arith.constant 0 : index
    %c2_47 = arith.constant 2 : index
    %c0_48 = arith.constant 0 : index
    %c0_49 = arith.constant 0 : index
    %98 = vector.load %arg9[%c0_46, %c2_47, %c0_48, %c0_49] : memref<2x4x8x128xf32, #tpu.memory_space<vmem>>, vector<1x1x8x128xf32>
    %99 = vector.shape_cast %98 : vector<1x1x8x128xf32> to vector<8x128xf32>
    %100 = vector.shape_cast %91 : vector<8x128xf32> to vector<1x1x8x128xf32>
    tpu.vector_store %arg9[%c0_46, %c2_47, %c0_48, %c0_49], %100 {strides = array<i32>} : memref<2x4x8x128xf32, #tpu.memory_space<vmem>>, vector<1x1x8x128xf32>,
    %c1_50 = arith.constant 1 : index
    %c2_51 = arith.constant 2 : index
    %c0_52 = arith.constant 0 : index
    %c0_53 = arith.constant 0 : index
    %101 = vector.load %arg9[%c1_50, %c2_51, %c0_52, %c0_53] : memref<2x4x8x128xf32, #tpu.memory_space<vmem>>, vector<1x1x8x128xf32>
    %102 = vector.shape_cast %101 : vector<1x1x8x128xf32> to vector<8x128xf32>
    %103 = vector.shape_cast %97 : vector<8x128xf32> to vector<1x1x8x128xf32>
    tpu.vector_store %arg9[%c1_50, %c2_51, %c0_52, %c0_53], %103 {strides = array<i32>} : memref<2x4x8x128xf32, #tpu.memory_space<vmem>>, vector<1x1x8x128xf32>,
    %cst_54 = arith.constant 1.000000e+00 : f32
    %104 = vector.broadcast %cst_54 : f32 to vector<8x128xf32>
    %105 = arith.subf %104, %91 : vector<8x128xf32>
    %106 = arith.mulf %81, %105 : vector<8x128xf32>
    %107 = arith.maximumf %82, %97 : vector<8x128xf32>
    %c0_55 = arith.constant 0 : index
    %c3 = arith.constant 3 : index
    %c0_56 = arith.constant 0 : index
    %c0_57 = arith.constant 0 : index
    %108 = vector.load %arg7[%c0_55, %c3, %c0_56, %c0_57] : memref<1x4x8x128xf32, #tpu.memory_space<vmem>>, vector<1x1x8x128xf32>
    %109 = vector.shape_cast %108 : vector<1x1x8x128xf32> to vector<8x128xf32>
    %110 = vector.broadcast %32 : f32 to vector<8x128xf32>
    %111 = arith.mulf %109, %110 : vector<8x128xf32>
    %112 = math.exp %111 : vector<8x128xf32>
    %cst_58 = arith.constant 1.000000e+00 : f32
    %113 = vector.broadcast %cst_58 : f32 to vector<8x128xf32>
    %114 = arith.addf %113, %112 : vector<8x128xf32>
    %cst_59 = arith.constant 1.000000e+00 : f32
    %115 = vector.broadcast %cst_59 : f32 to vector<8x128xf32>
    %116 = arith.divf %115, %114 : vector<8x128xf32>
    %c0_60 = arith.constant 0 : index
    %c3_61 = arith.constant 3 : index
    %c0_62 = arith.constant 0 : index
    %c0_63 = arith.constant 0 : index
    %117 = vector.load %arg6[%c0_60, %c3_61, %c0_62, %c0_63] : memref<1x4x8x128xf32, #tpu.memory_space<vmem>>, vector<1x1x8x128xf32>
    %118 = vector.shape_cast %117 : vector<1x1x8x128xf32> to vector<8x128xf32>
    %119 = vector.broadcast %31 : f32 to vector<8x128xf32>
    %120 = arith.subf %119, %118 : vector<8x128xf32>
    %121 = vector.broadcast %34 : f32 to vector<8x128xf32>
    %122 = arith.divf %120, %121 : vector<8x128xf32>
    %c0_64 = arith.constant 0 : index
    %c3_65 = arith.constant 3 : index
    %c0_66 = arith.constant 0 : index
    %c0_67 = arith.constant 0 : index
    %123 = vector.load %arg9[%c0_64, %c3_65, %c0_66, %c0_67] : memref<2x4x8x128xf32, #tpu.memory_space<vmem>>, vector<1x1x8x128xf32>
    %124 = vector.shape_cast %123 : vector<1x1x8x128xf32> to vector<8x128xf32>
    %125 = vector.shape_cast %116 : vector<8x128xf32> to vector<1x1x8x128xf32>
    tpu.vector_store %arg9[%c0_64, %c3_65, %c0_66, %c0_67], %125 {strides = array<i32>} : memref<2x4x8x128xf32, #tpu.memory_space<vmem>>, vector<1x1x8x128xf32>,
    %c1_68 = arith.constant 1 : index
    %c3_69 = arith.constant 3 : index
    %c0_70 = arith.constant 0 : index
    %c0_71 = arith.constant 0 : index
    %126 = vector.load %arg9[%c1_68, %c3_69, %c0_70, %c0_71] : memref<2x4x8x128xf32, #tpu.memory_space<vmem>>, vector<1x1x8x128xf32>
    %127 = vector.shape_cast %126 : vector<1x1x8x128xf32> to vector<8x128xf32>
    %128 = vector.shape_cast %122 : vector<8x128xf32> to vector<1x1x8x128xf32>
    tpu.vector_store %arg9[%c1_68, %c3_69, %c0_70, %c0_71], %128 {strides = array<i32>} : memref<2x4x8x128xf32, #tpu.memory_space<vmem>>, vector<1x1x8x128xf32>,
    %cst_72 = arith.constant 1.000000e+00 : f32
    %129 = vector.broadcast %cst_72 : f32 to vector<8x128xf32>
    %130 = arith.subf %129, %116 : vector<8x128xf32>
    %131 = arith.mulf %106, %130 : vector<8x128xf32>
    %132 = arith.maximumf %107, %122 : vector<8x128xf32>
    %cst_73 = arith.constant 1.000000e-10 : f32
    %133 = vector.broadcast %cst_73 : f32 to vector<8x128xf32>
    %134 = arith.maximumf %132, %133 : vector<8x128xf32>
    %cst_74 = arith.constant 1.000000e-10 : f32
    %135 = vector.broadcast %cst_74 : f32 to vector<8x128xf32>
    %136 = arith.subf %135, %134 : vector<8x128xf32>
    %137 = vector.broadcast %33 : f32 to vector<8x128xf32>
    %138 = arith.mulf %136, %137 : vector<8x128xf32>
    %139 = math.exp %138 : vector<8x128xf32>
    %cst_75 = arith.constant 1.000000e-10 : f32
    %140 = vector.broadcast %cst_75 : f32 to vector<8x128xf32>
    %141 = arith.maximumf %139, %140 : vector<8x128xf32>
    %142 = vector.broadcast %19 : f32 to vector<8x128xf32>
    %143 = arith.mulf %141, %142 : vector<8x128xf32>
    %144 = vector.broadcast %21 : f32 to vector<8x128xf32>
    %145 = arith.mulf %141, %144 : vector<8x128xf32>
    %146 = vector.broadcast %23 : f32 to vector<8x128xf32>
    %147 = arith.mulf %141, %146 : vector<8x128xf32>
    %c0_76 = arith.constant 0 : index
    %c0_77 = arith.constant 0 : index
    %c0_78 = arith.constant 0 : index
    %c0_79 = arith.constant 0 : index
    %148 = vector.load %arg9[%c0_76, %c0_77, %c0_78, %c0_79] : memref<2x4x8x128xf32, #tpu.memory_space<vmem>>, vector<1x1x8x128xf32>
    %149 = vector.shape_cast %148 : vector<1x1x8x128xf32> to vector<8x128xf32>
    %c1_80 = arith.constant 1 : index
    %c0_81 = arith.constant 0 : index
    %c0_82 = arith.constant 0 : index
    %c0_83 = arith.constant 0 : index
    %150 = vector.load %arg9[%c1_80, %c0_81, %c0_82, %c0_83] : memref<2x4x8x128xf32, #tpu.memory_space<vmem>>, vector<1x1x8x128xf32>
    %151 = vector.shape_cast %150 : vector<1x1x8x128xf32> to vector<8x128xf32>
    %152 = arith.subf %151, %134 : vector<8x128xf32>
    %153 = vector.broadcast %33 : f32 to vector<8x128xf32>
    %154 = arith.mulf %152, %153 : vector<8x128xf32>
    %155 = math.exp %154 : vector<8x128xf32>
    %156 = arith.mulf %149, %155 : vector<8x128xf32>
    %157 = arith.addf %141, %156 : vector<8x128xf32>
    %c0_84 = arith.constant 0 : index
    %c0_85 = arith.constant 0 : index
    %c0_86 = arith.constant 0 : index
    %c0_87 = arith.constant 0 : index
    %158 = vector.load %arg4[%c0_84, %c0_85, %c0_86, %c0_87] : memref<1x4x8x128xf32, #tpu.memory_space<vmem>>, vector<1x1x8x128xf32>
    %159 = vector.shape_cast %158 : vector<1x1x8x128xf32> to vector<8x128xf32>
    %c0_88 = arith.constant 0 : index
    %c0_89 = arith.constant 0 : index
    %c0_90 = arith.constant 0 : index
    %c0_91 = arith.constant 0 : index
    %160 = vector.load %arg5[%c0_88, %c0_89, %c0_90, %c0_91] : memref<1x4x8x128xf32, #tpu.memory_space<vmem>>, vector<1x1x8x128xf32>
    %161 = vector.shape_cast %160 : vector<1x1x8x128xf32> to vector<8x128xf32>
    %162 = vector.broadcast %7 : f32 to vector<8x128xf32>
    %163 = arith.mulf %162, %159 : vector<8x128xf32>
    %164 = vector.broadcast %1 : f32 to vector<8x128xf32>
    %165 = arith.addf %164, %163 : vector<8x128xf32>
    %c0_92 = arith.constant 0 : index
    %c0_93 = arith.constant 0 : index
    %c0_94 = arith.constant 0 : index
    %c0_95 = arith.constant 0 : index
    %c0_96 = arith.constant 0 : index
    %166 = vector.load %arg3[%c0_92, %c0_93, %c0_94, %c0_95, %c0_96] : memref<1x4x3x8x128xf32, #tpu.memory_space<vmem>>, vector<1x1x1x8x128xf32>
    %167 = vector.shape_cast %166 : vector<1x1x1x8x128xf32> to vector<8x128xf32>
    %168 = arith.mulf %165, %167 : vector<8x128xf32>
    %169 = vector.broadcast %13 : f32 to vector<8x128xf32>
    %170 = arith.mulf %169, %161 : vector<8x128xf32>
    %171 = arith.addf %168, %170 : vector<8x128xf32>
    %172 = arith.mulf %156, %171 : vector<8x128xf32>
    %173 = arith.addf %143, %172 : vector<8x128xf32>
    %174 = vector.broadcast %9 : f32 to vector<8x128xf32>
    %175 = arith.mulf %174, %159 : vector<8x128xf32>
    %176 = vector.broadcast %3 : f32 to vector<8x128xf32>
    %177 = arith.addf %176, %175 : vector<8x128xf32>
    %c0_97 = arith.constant 0 : index
    %c0_98 = arith.constant 0 : index
    %c1_99 = arith.constant 1 : index
    %c0_100 = arith.constant 0 : index
    %c0_101 = arith.constant 0 : index
    %178 = vector.load %arg3[%c0_97, %c0_98, %c1_99, %c0_100, %c0_101] : memref<1x4x3x8x128xf32, #tpu.memory_space<vmem>>, vector<1x1x1x8x128xf32>
    %179 = vector.shape_cast %178 : vector<1x1x1x8x128xf32> to vector<8x128xf32>
    %180 = arith.mulf %177, %179 : vector<8x128xf32>
    %181 = vector.broadcast %15 : f32 to vector<8x128xf32>
    %182 = arith.mulf %181, %161 : vector<8x128xf32>
    %183 = arith.addf %180, %182 : vector<8x128xf32>
    %184 = arith.mulf %156, %183 : vector<8x128xf32>
    %185 = arith.addf %145, %184 : vector<8x128xf32>
    %186 = vector.broadcast %11 : f32 to vector<8x128xf32>
    %187 = arith.mulf %186, %159 : vector<8x128xf32>
    %188 = vector.broadcast %5 : f32 to vector<8x128xf32>
    %189 = arith.addf %188, %187 : vector<8x128xf32>
    %c0_102 = arith.constant 0 : index
    %c0_103 = arith.constant 0 : index
    %c2_104 = arith.constant 2 : index
    %c0_105 = arith.constant 0 : index
    %c0_106 = arith.constant 0 : index
    %190 = vector.load %arg3[%c0_102, %c0_103, %c2_104, %c0_105, %c0_106] : memref<1x4x3x8x128xf32, #tpu.memory_space<vmem>>, vector<1x1x1x8x128xf32>
    %191 = vector.shape_cast %190 : vector<1x1x1x8x128xf32> to vector<8x128xf32>
    %192 = arith.mulf %189, %191 : vector<8x128xf32>
    %193 = vector.broadcast %17 : f32 to vector<8x128xf32>
    %194 = arith.mulf %193, %161 : vector<8x128xf32>
    %195 = arith.addf %192, %194 : vector<8x128xf32>
    %196 = arith.mulf %156, %195 : vector<8x128xf32>
    %197 = arith.addf %147, %196 : vector<8x128xf32>
    %c0_107 = arith.constant 0 : index
    %c1_108 = arith.constant 1 : index
    %c0_109 = arith.constant 0 : index
    %c0_110 = arith.constant 0 : index
    %198 = vector.load %arg9[%c0_107, %c1_108, %c0_109, %c0_110] : memref<2x4x8x128xf32, #tpu.memory_space<vmem>>, vector<1x1x8x128xf32>
    %199 = vector.shape_cast %198 : vector<1x1x8x128xf32> to vector<8x128xf32>
    %c1_111 = arith.constant 1 : index
    %c1_112 = arith.constant 1 : index
    %c0_113 = arith.constant 0 : index
    %c0_114 = arith.constant 0 : index
    %200 = vector.load %arg9[%c1_111, %c1_112, %c0_113, %c0_114] : memref<2x4x8x128xf32, #tpu.memory_space<vmem>>, vector<1x1x8x128xf32>
    %201 = vector.shape_cast %200 : vector<1x1x8x128xf32> to vector<8x128xf32>
    %202 = arith.subf %201, %134 : vector<8x128xf32>
    %203 = vector.broadcast %33 : f32 to vector<8x128xf32>
    %204 = arith.mulf %202, %203 : vector<8x128xf32>
    %205 = math.exp %204 : vector<8x128xf32>
    %206 = arith.mulf %199, %205 : vector<8x128xf32>
    %207 = arith.addf %157, %206 : vector<8x128xf32>
    %c0_115 = arith.constant 0 : index
    %c1_116 = arith.constant 1 : index
    %c0_117 = arith.constant 0 : index
    %c0_118 = arith.constant 0 : index
    %208 = vector.load %arg4[%c0_115, %c1_116, %c0_117, %c0_118] : memref<1x4x8x128xf32, #tpu.memory_space<vmem>>, vector<1x1x8x128xf32>
    %209 = vector.shape_cast %208 : vector<1x1x8x128xf32> to vector<8x128xf32>
    %c0_119 = arith.constant 0 : index
    %c1_120 = arith.constant 1 : index
    %c0_121 = arith.constant 0 : index
    %c0_122 = arith.constant 0 : index
    %210 = vector.load %arg5[%c0_119, %c1_120, %c0_121, %c0_122] : memref<1x4x8x128xf32, #tpu.memory_space<vmem>>, vector<1x1x8x128xf32>
    %211 = vector.shape_cast %210 : vector<1x1x8x128xf32> to vector<8x128xf32>
    %212 = vector.broadcast %7 : f32 to vector<8x128xf32>
    %213 = arith.mulf %212, %209 : vector<8x128xf32>
    %214 = vector.broadcast %1 : f32 to vector<8x128xf32>
    %215 = arith.addf %214, %213 : vector<8x128xf32>
    %c0_123 = arith.constant 0 : index
    %c1_124 = arith.constant 1 : index
    %c0_125 = arith.constant 0 : index
    %c0_126 = arith.constant 0 : index
    %c0_127 = arith.constant 0 : index
    %216 = vector.load %arg3[%c0_123, %c1_124, %c0_125, %c0_126, %c0_127] : memref<1x4x3x8x128xf32, #tpu.memory_space<vmem>>, vector<1x1x1x8x128xf32>
    %217 = vector.shape_cast %216 : vector<1x1x1x8x128xf32> to vector<8x128xf32>
    %218 = arith.mulf %215, %217 : vector<8x128xf32>
    %219 = vector.broadcast %13 : f32 to vector<8x128xf32>
    %220 = arith.mulf %219, %211 : vector<8x128xf32>
    %221 = arith.addf %218, %220 : vector<8x128xf32>
    %222 = arith.mulf %206, %221 : vector<8x128xf32>
    %223 = arith.addf %173, %222 : vector<8x128xf32>
    %224 = vector.broadcast %9 : f32 to vector<8x128xf32>
    %225 = arith.mulf %224, %209 : vector<8x128xf32>
    %226 = vector.broadcast %3 : f32 to vector<8x128xf32>
    %227 = arith.addf %226, %225 : vector<8x128xf32>
    %c0_128 = arith.constant 0 : index
    %c1_129 = arith.constant 1 : index
    %c1_130 = arith.constant 1 : index
    %c0_131 = arith.constant 0 : index
    %c0_132 = arith.constant 0 : index
    %228 = vector.load %arg3[%c0_128, %c1_129, %c1_130, %c0_131, %c0_132] : memref<1x4x3x8x128xf32, #tpu.memory_space<vmem>>, vector<1x1x1x8x128xf32>
    %229 = vector.shape_cast %228 : vector<1x1x1x8x128xf32> to vector<8x128xf32>
    %230 = arith.mulf %227, %229 : vector<8x128xf32>
    %231 = vector.broadcast %15 : f32 to vector<8x128xf32>
    %232 = arith.mulf %231, %211 : vector<8x128xf32>
    %233 = arith.addf %230, %232 : vector<8x128xf32>
    %234 = arith.mulf %206, %233 : vector<8x128xf32>
    %235 = arith.addf %185, %234 : vector<8x128xf32>
    %236 = vector.broadcast %11 : f32 to vector<8x128xf32>
    %237 = arith.mulf %236, %209 : vector<8x128xf32>
    %238 = vector.broadcast %5 : f32 to vector<8x128xf32>
    %239 = arith.addf %238, %237 : vector<8x128xf32>
    %c0_133 = arith.constant 0 : index
    %c1_134 = arith.constant 1 : index
    %c2_135 = arith.constant 2 : index
    %c0_136 = arith.constant 0 : index
    %c0_137 = arith.constant 0 : index
    %240 = vector.load %arg3[%c0_133, %c1_134, %c2_135, %c0_136, %c0_137] : memref<1x4x3x8x128xf32, #tpu.memory_space<vmem>>, vector<1x1x1x8x128xf32>
    %241 = vector.shape_cast %240 : vector<1x1x1x8x128xf32> to vector<8x128xf32>
    %242 = arith.mulf %239, %241 : vector<8x128xf32>
    %243 = vector.broadcast %17 : f32 to vector<8x128xf32>
    %244 = arith.mulf %243, %211 : vector<8x128xf32>
    %245 = arith.addf %242, %244 : vector<8x128xf32>
    %246 = arith.mulf %206, %245 : vector<8x128xf32>
    %247 = arith.addf %197, %246 : vector<8x128xf32>
    %c0_138 = arith.constant 0 : index
    %c2_139 = arith.constant 2 : index
    %c0_140 = arith.constant 0 : index
    %c0_141 = arith.constant 0 : index
    %248 = vector.load %arg9[%c0_138, %c2_139, %c0_140, %c0_141] : memref<2x4x8x128xf32, #tpu.memory_space<vmem>>, vector<1x1x8x128xf32>
    %249 = vector.shape_cast %248 : vector<1x1x8x128xf32> to vector<8x128xf32>
    %c1_142 = arith.constant 1 : index
    %c2_143 = arith.constant 2 : index
    %c0_144 = arith.constant 0 : index
    %c0_145 = arith.constant 0 : index
    %250 = vector.load %arg9[%c1_142, %c2_143, %c0_144, %c0_145] : memref<2x4x8x128xf32, #tpu.memory_space<vmem>>, vector<1x1x8x128xf32>
    %251 = vector.shape_cast %250 : vector<1x1x8x128xf32> to vector<8x128xf32>
    %252 = arith.subf %251, %134 : vector<8x128xf32>
    %253 = vector.broadcast %33 : f32 to vector<8x128xf32>
    %254 = arith.mulf %252, %253 : vector<8x128xf32>
    %255 = math.exp %254 : vector<8x128xf32>
    %256 = arith.mulf %249, %255 : vector<8x128xf32>
    %257 = arith.addf %207, %256 : vector<8x128xf32>
    %c0_146 = arith.constant 0 : index
    %c2_147 = arith.constant 2 : index
    %c0_148 = arith.constant 0 : index
    %c0_149 = arith.constant 0 : index
    %258 = vector.load %arg4[%c0_146, %c2_147, %c0_148, %c0_149] : memref<1x4x8x128xf32, #tpu.memory_space<vmem>>, vector<1x1x8x128xf32>
    %259 = vector.shape_cast %258 : vector<1x1x8x128xf32> to vector<8x128xf32>
    %c0_150 = arith.constant 0 : index
    %c2_151 = arith.constant 2 : index
    %c0_152 = arith.constant 0 : index
    %c0_153 = arith.constant 0 : index
    %260 = vector.load %arg5[%c0_150, %c2_151, %c0_152, %c0_153] : memref<1x4x8x128xf32, #tpu.memory_space<vmem>>, vector<1x1x8x128xf32>
    %261 = vector.shape_cast %260 : vector<1x1x8x128xf32> to vector<8x128xf32>
    %262 = vector.broadcast %7 : f32 to vector<8x128xf32>
    %263 = arith.mulf %262, %259 : vector<8x128xf32>
    %264 = vector.broadcast %1 : f32 to vector<8x128xf32>
    %265 = arith.addf %264, %263 : vector<8x128xf32>
    %c0_154 = arith.constant 0 : index
    %c2_155 = arith.constant 2 : index
    %c0_156 = arith.constant 0 : index
    %c0_157 = arith.constant 0 : index
    %c0_158 = arith.constant 0 : index
    %266 = vector.load %arg3[%c0_154, %c2_155, %c0_156, %c0_157, %c0_158] : memref<1x4x3x8x128xf32, #tpu.memory_space<vmem>>, vector<1x1x1x8x128xf32>
    %267 = vector.shape_cast %266 : vector<1x1x1x8x128xf32> to vector<8x128xf32>
    %268 = arith.mulf %265, %267 : vector<8x128xf32>
    %269 = vector.broadcast %13 : f32 to vector<8x128xf32>
    %270 = arith.mulf %269, %261 : vector<8x128xf32>
    %271 = arith.addf %268, %270 : vector<8x128xf32>
    %272 = arith.mulf %256, %271 : vector<8x128xf32>
    %273 = arith.addf %223, %272 : vector<8x128xf32>
    %274 = vector.broadcast %9 : f32 to vector<8x128xf32>
    %275 = arith.mulf %274, %259 : vector<8x128xf32>
    %276 = vector.broadcast %3 : f32 to vector<8x128xf32>
    %277 = arith.addf %276, %275 : vector<8x128xf32>
    %c0_159 = arith.constant 0 : index
    %c2_160 = arith.constant 2 : index
    %c1_161 = arith.constant 1 : index
    %c0_162 = arith.constant 0 : index
    %c0_163 = arith.constant 0 : index
    %278 = vector.load %arg3[%c0_159, %c2_160, %c1_161, %c0_162, %c0_163] : memref<1x4x3x8x128xf32, #tpu.memory_space<vmem>>, vector<1x1x1x8x128xf32>
    %279 = vector.shape_cast %278 : vector<1x1x1x8x128xf32> to vector<8x128xf32>
    %280 = arith.mulf %277, %279 : vector<8x128xf32>
    %281 = vector.broadcast %15 : f32 to vector<8x128xf32>
    %282 = arith.mulf %281, %261 : vector<8x128xf32>
    %283 = arith.addf %280, %282 : vector<8x128xf32>
    %284 = arith.mulf %256, %283 : vector<8x128xf32>
    %285 = arith.addf %235, %284 : vector<8x128xf32>
    %286 = vector.broadcast %11 : f32 to vector<8x128xf32>
    %287 = arith.mulf %286, %259 : vector<8x128xf32>
    %288 = vector.broadcast %5 : f32 to vector<8x128xf32>
    %289 = arith.addf %288, %287 : vector<8x128xf32>
    %c0_164 = arith.constant 0 : index
    %c2_165 = arith.constant 2 : index
    %c2_166 = arith.constant 2 : index
    %c0_167 = arith.constant 0 : index
    %c0_168 = arith.constant 0 : index
    %290 = vector.load %arg3[%c0_164, %c2_165, %c2_166, %c0_167, %c0_168] : memref<1x4x3x8x128xf32, #tpu.memory_space<vmem>>, vector<1x1x1x8x128xf32>
    %291 = vector.shape_cast %290 : vector<1x1x1x8x128xf32> to vector<8x128xf32>
    %292 = arith.mulf %289, %291 : vector<8x128xf32>
    %293 = vector.broadcast %17 : f32 to vector<8x128xf32>
    %294 = arith.mulf %293, %261 : vector<8x128xf32>
    %295 = arith.addf %292, %294 : vector<8x128xf32>
    %296 = arith.mulf %256, %295 : vector<8x128xf32>
    %297 = arith.addf %247, %296 : vector<8x128xf32>
    %c0_169 = arith.constant 0 : index
    %c3_170 = arith.constant 3 : index
    %c0_171 = arith.constant 0 : index
    %c0_172 = arith.constant 0 : index
    %298 = vector.load %arg9[%c0_169, %c3_170, %c0_171, %c0_172] : memref<2x4x8x128xf32, #tpu.memory_space<vmem>>, vector<1x1x8x128xf32>
    %299 = vector.shape_cast %298 : vector<1x1x8x128xf32> to vector<8x128xf32>
    %c1_173 = arith.constant 1 : index
    %c3_174 = arith.constant 3 : index
    %c0_175 = arith.constant 0 : index
    %c0_176 = arith.constant 0 : index
    %300 = vector.load %arg9[%c1_173, %c3_174, %c0_175, %c0_176] : memref<2x4x8x128xf32, #tpu.memory_space<vmem>>, vector<1x1x8x128xf32>
    %301 = vector.shape_cast %300 : vector<1x1x8x128xf32> to vector<8x128xf32>
    %302 = arith.subf %301, %134 : vector<8x128xf32>
    %303 = vector.broadcast %33 : f32 to vector<8x128xf32>
    %304 = arith.mulf %302, %303 : vector<8x128xf32>
    %305 = math.exp %304 : vector<8x128xf32>
    %306 = arith.mulf %299, %305 : vector<8x128xf32>
    %307 = arith.addf %257, %306 : vector<8x128xf32>
    %c0_177 = arith.constant 0 : index
    %c3_178 = arith.constant 3 : index
    %c0_179 = arith.constant 0 : index
    %c0_180 = arith.constant 0 : index
    %308 = vector.load %arg4[%c0_177, %c3_178, %c0_179, %c0_180] : memref<1x4x8x128xf32, #tpu.memory_space<vmem>>, vector<1x1x8x128xf32>
    %309 = vector.shape_cast %308 : vector<1x1x8x128xf32> to vector<8x128xf32>
    %c0_181 = arith.constant 0 : index
    %c3_182 = arith.constant 3 : index
    %c0_183 = arith.constant 0 : index
    %c0_184 = arith.constant 0 : index
    %310 = vector.load %arg5[%c0_181, %c3_182, %c0_183, %c0_184] : memref<1x4x8x128xf32, #tpu.memory_space<vmem>>, vector<1x1x8x128xf32>
    %311 = vector.shape_cast %310 : vector<1x1x8x128xf32> to vector<8x128xf32>
    %312 = vector.broadcast %7 : f32 to vector<8x128xf32>
    %313 = arith.mulf %312, %309 : vector<8x128xf32>
    %314 = vector.broadcast %1 : f32 to vector<8x128xf32>
    %315 = arith.addf %314, %313 : vector<8x128xf32>
    %c0_185 = arith.constant 0 : index
    %c3_186 = arith.constant 3 : index
    %c0_187 = arith.constant 0 : index
    %c0_188 = arith.constant 0 : index
    %c0_189 = arith.constant 0 : index
    %316 = vector.load %arg3[%c0_185, %c3_186, %c0_187, %c0_188, %c0_189] : memref<1x4x3x8x128xf32, #tpu.memory_space<vmem>>, vector<1x1x1x8x128xf32>
    %317 = vector.shape_cast %316 : vector<1x1x1x8x128xf32> to vector<8x128xf32>
    %318 = arith.mulf %315, %317 : vector<8x128xf32>
    %319 = vector.broadcast %13 : f32 to vector<8x128xf32>
    %320 = arith.mulf %319, %311 : vector<8x128xf32>
    %321 = arith.addf %318, %320 : vector<8x128xf32>
    %322 = arith.mulf %306, %321 : vector<8x128xf32>
    %323 = arith.addf %273, %322 : vector<8x128xf32>
    %324 = vector.broadcast %9 : f32 to vector<8x128xf32>
    %325 = arith.mulf %324, %309 : vector<8x128xf32>
    %326 = vector.broadcast %3 : f32 to vector<8x128xf32>
    %327 = arith.addf %326, %325 : vector<8x128xf32>
    %c0_190 = arith.constant 0 : index
    %c3_191 = arith.constant 3 : index
    %c1_192 = arith.constant 1 : index
    %c0_193 = arith.constant 0 : index
    %c0_194 = arith.constant 0 : index
    %328 = vector.load %arg3[%c0_190, %c3_191, %c1_192, %c0_193, %c0_194] : memref<1x4x3x8x128xf32, #tpu.memory_space<vmem>>, vector<1x1x1x8x128xf32>
    %329 = vector.shape_cast %328 : vector<1x1x1x8x128xf32> to vector<8x128xf32>
    %330 = arith.mulf %327, %329 : vector<8x128xf32>
    %331 = vector.broadcast %15 : f32 to vector<8x128xf32>
    %332 = arith.mulf %331, %311 : vector<8x128xf32>
    %333 = arith.addf %330, %332 : vector<8x128xf32>
    %334 = arith.mulf %306, %333 : vector<8x128xf32>
    %335 = arith.addf %285, %334 : vector<8x128xf32>
    %336 = vector.broadcast %11 : f32 to vector<8x128xf32>
    %337 = arith.mulf %336, %309 : vector<8x128xf32>
    %338 = vector.broadcast %5 : f32 to vector<8x128xf32>
    %339 = arith.addf %338, %337 : vector<8x128xf32>
    %c0_195 = arith.constant 0 : index
    %c3_196 = arith.constant 3 : index
    %c2_197 = arith.constant 2 : index
    %c0_198 = arith.constant 0 : index
    %c0_199 = arith.constant 0 : index
    %340 = vector.load %arg3[%c0_195, %c3_196, %c2_197, %c0_198, %c0_199] : memref<1x4x3x8x128xf32, #tpu.memory_space<vmem>>, vector<1x1x1x8x128xf32>
    %341 = vector.shape_cast %340 : vector<1x1x1x8x128xf32> to vector<8x128xf32>
    %342 = arith.mulf %339, %341 : vector<8x128xf32>
    %343 = vector.broadcast %17 : f32 to vector<8x128xf32>
    %344 = arith.mulf %343, %311 : vector<8x128xf32>
    %345 = arith.addf %342, %344 : vector<8x128xf32>
    %346 = arith.mulf %306, %345 : vector<8x128xf32>
    %347 = arith.addf %297, %346 : vector<8x128xf32>
    %348 = tpu.reciprocal %307 : vector<8x128xf32> -> vector<8x128xf32>
    %349 = arith.mulf %323, %348 : vector<8x128xf32>
    %c0_200 = arith.constant 0 : index
    %c0_201 = arith.constant 0 : index
    %c0_202 = arith.constant 0 : index
    %c0_203 = arith.constant 0 : index
    %350 = vector.load %arg8[%c0_200, %c0_201, %c0_202, %c0_203] : memref<1x4x8x128xf32, #tpu.memory_space<vmem>>, vector<1x1x8x128xf32>
    %351 = vector.shape_cast %350 : vector<1x1x8x128xf32> to vector<8x128xf32>
    %352 = vector.shape_cast %349 : vector<8x128xf32> to vector<1x1x8x128xf32>
    tpu.vector_store %arg8[%c0_200, %c0_201, %c0_202, %c0_203], %352 {strides = array<i32>} : memref<1x4x8x128xf32, #tpu.memory_space<vmem>>, vector<1x1x8x128xf32>,
    %353 = arith.mulf %335, %348 : vector<8x128xf32>
    %c0_204 = arith.constant 0 : index
    %c1_205 = arith.constant 1 : index
    %c0_206 = arith.constant 0 : index
    %c0_207 = arith.constant 0 : index
    %354 = vector.load %arg8[%c0_204, %c1_205, %c0_206, %c0_207] : memref<1x4x8x128xf32, #tpu.memory_space<vmem>>, vector<1x1x8x128xf32>
    %355 = vector.shape_cast %354 : vector<1x1x8x128xf32> to vector<8x128xf32>
    %356 = vector.shape_cast %353 : vector<8x128xf32> to vector<1x1x8x128xf32>
    tpu.vector_store %arg8[%c0_204, %c1_205, %c0_206, %c0_207], %356 {strides = array<i32>} : memref<1x4x8x128xf32, #tpu.memory_space<vmem>>, vector<1x1x8x128xf32>,
    %357 = arith.mulf %347, %348 : vector<8x128xf32>
    %c0_208 = arith.constant 0 : index
    %c2_209 = arith.constant 2 : index
    %c0_210 = arith.constant 0 : index
    %c0_211 = arith.constant 0 : index
    %358 = vector.load %arg8[%c0_208, %c2_209, %c0_210, %c0_211] : memref<1x4x8x128xf32, #tpu.memory_space<vmem>>, vector<1x1x8x128xf32>
    %359 = vector.shape_cast %358 : vector<1x1x8x128xf32> to vector<8x128xf32>
    %360 = vector.shape_cast %357 : vector<8x128xf32> to vector<1x1x8x128xf32>
    tpu.vector_store %arg8[%c0_208, %c2_209, %c0_210, %c0_211], %360 {strides = array<i32>} : memref<1x4x8x128xf32, #tpu.memory_space<vmem>>, vector<1x1x8x128xf32>,
    %cst_212 = arith.constant 1.000000e+00 : f32
    %361 = vector.broadcast %cst_212 : f32 to vector<8x128xf32>
    %362 = arith.subf %361, %131 : vector<8x128xf32>
    %c0_213 = arith.constant 0 : index
    %c3_214 = arith.constant 3 : index
    %c0_215 = arith.constant 0 : index
    %c0_216 = arith.constant 0 : index
    %363 = vector.load %arg8[%c0_213, %c3_214, %c0_215, %c0_216] : memref<1x4x8x128xf32, #tpu.memory_space<vmem>>, vector<1x1x8x128xf32>
    %364 = vector.shape_cast %363 : vector<1x1x8x128xf32> to vector<8x128xf32>
    %365 = vector.shape_cast %362 : vector<8x128xf32> to vector<1x1x8x128xf32>
    tpu.vector_store %arg8[%c0_213, %c3_214, %c0_215, %c0_216], %365 {strides = array<i32>} : memref<1x4x8x128xf32, #tpu.memory_space<vmem>>, vector<1x1x8x128xf32>,
    return
  }
  func.func @transform_0(%arg0: i32, %arg1: i32, %arg2: memref<2x24xf32, #tpu.memory_space<smem>>) -> (i32, i32, i32, i32, i32) {
    %c0_i32 = arith.constant 0 : i32
    %c0_i32_0 = arith.constant 0 : i32
    %c0_i32_1 = arith.constant 0 : i32
    %c0_i32_2 = arith.constant 0 : i32
    return %arg0, %c0_i32, %c0_i32_0, %arg1, %c0_i32_1 : i32, i32, i32, i32, i32
  }
  func.func @transform_1(%arg0: i32, %arg1: i32, %arg2: memref<2x24xf32, #tpu.memory_space<smem>>) -> (i32, i32, i32, i32) {
    %c0_i32 = arith.constant 0 : i32
    %c0_i32_0 = arith.constant 0 : i32
    %c0_i32_1 = arith.constant 0 : i32
    return %arg0, %c0_i32, %arg1, %c0_i32_0 : i32, i32, i32, i32
  }
  func.func @transform_2(%arg0: i32, %arg1: i32, %arg2: memref<2x24xf32, #tpu.memory_space<smem>>) -> (i32, i32, i32, i32) {
    %c0_i32 = arith.constant 0 : i32
    %c0_i32_0 = arith.constant 0 : i32
    %c0_i32_1 = arith.constant 0 : i32
    return %arg0, %c0_i32, %arg1, %c0_i32_0 : i32, i32, i32, i32
  }
  func.func @transform_3(%arg0: i32, %arg1: i32, %arg2: memref<2x24xf32, #tpu.memory_space<smem>>) -> (i32, i32, i32, i32) {
    %c0_i32 = arith.constant 0 : i32
    %c0_i32_0 = arith.constant 0 : i32
    %c0_i32_1 = arith.constant 0 : i32
    return %arg0, %c0_i32, %arg1, %c0_i32_0 : i32, i32, i32, i32
  }
  func.func @transform_4(%arg0: i32, %arg1: i32, %arg2: memref<2x24xf32, #tpu.memory_space<smem>>) -> (i32, i32, i32, i32) {
    %c0_i32 = arith.constant 0 : i32
    %c0_i32_0 = arith.constant 0 : i32
    %c0_i32_1 = arith.constant 0 : i32
    return %arg0, %c0_i32, %arg1, %c0_i32_0 : i32, i32, i32, i32
  }
  func.func @transform_5(%arg0: i32, %arg1: i32, %arg2: memref<2x24xf32, #tpu.memory_space<smem>>) -> (i32, i32, i32, i32) {
    %c0_i32 = arith.constant 0 : i32
    %c0_i32_0 = arith.constant 0 : i32
    %c0_i32_1 = arith.constant 0 : i32
    return %arg0, %c0_i32, %arg1, %c0_i32_0 : i32, i32, i32, i32
  }
}

</mosaic_0001>

<bundles_post_ra>
// kernel: textured_phong_forward.2
= control target key start
LH: loop header
LB: loop body
LE: loop exit
PB: predicated region body
PF: predicated region fallthrough
CT: control target
= control target key end

     0   :  { %s1352_s0 = inlined_call_operand.vmem [shape: f32[2,24], index: 0, kind: input, shape index: {}]   ;;  %s1353_s1 = inlined_call_operand.vmem [shape: f32[24,2,32,128], index: 1, kind: input, shape index: {}]   ;;  %s1354_s2 = inlined_call_operand.vmem [shape: f32[2,3,32,128], index: 2, kind: input, shape index: {}]   ;;  %s1355_s3 = inlined_call_operand.vmem [shape: f32[2,2,32,128], index: 3, kind: output, shape index: {0}]   ;;  %s1356_s4 = inlined_call_operand.vmem [shape: f32[2,32,128], index: 4, kind: output, shape index: {1}]   ;;  %s1357_s5 = inlined_call_operand.vmem [shape: f32[2,32,128], index: 5, kind: output, shape index: {2}]  }
   0x1   :  { %s11_s20 = sshll.u32 %s1352_s0, 4  ;;  %s12_s20 = int_to_ptr.vmem [resolvable:$true] %s11_s20 }
   0x2   :  { %s981_s21 = scalar_lea.vmem %s12_s20, 32  ;;  %p986_p1 = scmp.lt.s32.totalorder %s12_s20, %s12_s20 }
   0x3   :  { %p982_p0 = scmp.ne.s32.totalorder %s12_s20, %s981_s21  ;;  %p987_p2 = scmp.lt.s32.totalorder %s981_s21, %s981_s21 }
   0x5   :  { %p988_p3 = por %p987_p2, %p986_p1 }
   0x7   :  { %p989_p4 = pnand %p988_p3, %p982_p0 }
   0x9   :  { %992 = shalt.err (!%p989_p4)  }
   0xa   :  { %s1051_s22 = smov [#allocation3]  }
   0xb   :  { %14 = dma.vmem_to_smem %s12_s20, 32, %s1051_s22, [#allocation2] }
   0xc   :  { %1021 = dma.done.wait [#allocation2], 32 }
   0xd   :  { %1022 = vsyncadd [#allocation2], 4294967264 }
   0xe   :  { %16 = sfence }
   0xf   :  { %s1085_s23 = smov 0   ;;  %s1087_s24 = smov 0  }
  0x10   :  { %s1089_s25 = smov 0   ;;  %s1091_s0 = smov 0  }
  0x11   :  { %s1093_s26 = smov 0   ;;  %s1095_s27 = smov 0  }
  0x12   :  { %s1097_s28 = smov 0  }
  0x13 LB: > { %s31_s29 = sadd.s32 1, %s1041_s26  ;;  %s34_s30 = sadd.s32 1, %s1045_s27  ;;  %s1049_s28 = sphi %s1097_s28, %s22_s28   ;;  %s1045_s27 = sphi %s1095_s27, %s1365_s27   ;;  %s1041_s26 = sphi %s1093_s26, %s1364_s26   ;;  %s1037_s0 = sphi %s1091_s0, %s1363_s0   ;;  %s1033_s25 = sphi %s1089_s25, %s1362_s25   ;;  %s1029_s24 = sphi %s1087_s24, %s1361_s24   ;;  %s1025_s23 = sphi %s1085_s23, %s1360_s23  }
  0x14   : > { %p32_p5 = scmp.ge.s32.totalorder %s31_s29, 4  ;;  %s864_s6 = sadd.s32 4294967295, %s1049_s28  }
  0x15   : > { %p50_p6 = scmp.ne.s32.totalorder %s1029_s24, %s1025_s23  ;;  %p51_p7 = scmp.eq.s32.totalorder %s1049_s28, 0 }
  0x16   : > { %s1367_s29 = smov (%p32_p5, %s31_s29), 0  ;;  %s1369_s30 = smov (!%p32_p5, %s34_s30), %s1045_s27 }
  0x17   : > { %p36_p8 = scmp.ge.s32.totalorder %s1369_s30, 2  ;;  %p110_p9 = scmp.eq.s32.totalorder %s864_s6, 7 }
  0x18   : > { %s39_s7 = ssub.s32 %s1041_s26, %s1367_s29  ;;  %p1131_p10 = por %p51_p7, %p50_p6 }
  0x19   : > { %s1371_s30 = smov (%p36_p8, %s1369_s30), 0  ;;  %p1137_p11 = por %p110_p9, %p50_p6 }
  0x1a   : > { %s38_s10 = ssub.s32 %s1045_s27, %s1371_s30  ;;  %s43_s12 = sadd.s32 1, %s1029_s24 }
  0x1b   : > { %s40_s11 = sor.u32 %s39_s7, %s38_s10  ;;  %p867_p13 = scmp.ge.s32.totalorder %s1049_s28, 8 }
  0x1c   : > { %p41_p12 = scmp.eq.s32.totalorder %s40_s11, 0 }
  0x1d   : > { %188 = sbr.rel (%p867_p13) target bundleno = 76 (0x4c), region = 16 }
  0x1e   : > { %s1145_s13 = scalar_select %p41_p12, %s1029_s24, %s43_s12  }
  0x24   : > { %191 = sbr.rel (!%p1131_p10) target bundleno = 66 (0x42), region = 20  ;;  %s193_s14 = sand.u32 (%p1131_p10), 1, %s1029_s24  }
  0x25   : > { %s868_s15 = sshll.u32 (%p1131_p10), %s1045_s27, 2  ;;  %s909_s16 = smul.u32 (%p1131_p10), 192, %s193_s14 }
  0x26   : > { %s197_s17 = sadd.s32 (%p1131_p10), %s1041_s26, %s868_s15 }
  0x27   : > { %s869_s18 = sshll.u32 (%p1131_p10), %s197_s17, 3  ;;  %s1161_s22 = scalar_lea.vmem (%p1131_p10), [#allocation4], %s909_s16 }
  0x28   : > { %s1156_s21 = scalar_lea.vmem (%p1131_p10), %s1353_s1, %s869_s18 }
  0x29   : > { %v273_v0 = vld [vmem:[%s1156_s21] sm:$0xff] (%p1131_p10) }
  0x2a   : > { %v275_v1 = vld [vmem:[%s1156_s21 + $0x40] sm:$0xff] (%p1131_p10)  ;;  %274 = vst [vmem:[%s1161_s22] sm:$0xff] (%p1131_p10), %v273_v0 }
  0x2b   : > { %v277_v2 = vld [vmem:[%s1156_s21 + $0x80] sm:$0xff]  ;;  %276 = vst [vmem:[%s1161_s22 + $0x8] sm:$0xff] %v275_v1 }
  0x2c   : > { %278 = vst [vmem:[%s1161_s22 + $0x10] sm:$0xff] %v277_v2  ;;  %v279_v3 = vld [vmem:[%s1156_s21 + $0xc0] sm:$0xff] }
  0x2d   : > { %v281_v4 = vld [vmem:[%s1156_s21 + $0x100] sm:$0xff]  ;;  %280 = vst [vmem:[%s1161_s22 + $0x18] sm:$0xff] %v279_v3 }
  0x2e   : > { %v283_v5 = vld [vmem:[%s1156_s21 + $0x140] sm:$0xff]  ;;  %282 = vst [vmem:[%s1161_s22 + $0x20] sm:$0xff] %v281_v4 }
  0x2f   : > { %284 = vst [vmem:[%s1161_s22 + $0x28] sm:$0xff] %v283_v5  ;;  %v285_v6 = vld [vmem:[%s1156_s21 + $0x180] sm:$0xff] }
  0x30   : > { %v287_v7 = vld [vmem:[%s1156_s21 + $0x1c0] sm:$0xff]  ;;  %286 = vst [vmem:[%s1161_s22 + $0x30] sm:$0xff] %v285_v6 }
  0x31   : > { %v289_v8 = vld [vmem:[%s1156_s21 + $0x200] sm:$0xff]  ;;  %288 = vst [vmem:[%s1161_s22 + $0x38] sm:$0xff] %v287_v7 }
  0x32   : > { %290 = vst [vmem:[%s1161_s22 + $0x40] sm:$0xff] %v289_v8  ;;  %v291_v9 = vld [vmem:[%s1156_s21 + $0x240] sm:$0xff] }
  0x33   : > { %v293_v10 = vld [vmem:[%s1156_s21 + $0x280] sm:$0xff]  ;;  %292 = vst [vmem:[%s1161_s22 + $0x48] sm:$0xff] %v291_v9 }
  0x34   : > { %v295_v11 = vld [vmem:[%s1156_s21 + $0x2c0] sm:$0xff]  ;;  %294 = vst [vmem:[%s1161_s22 + $0x50] sm:$0xff] %v293_v10 }
  0x35   : > { %296 = vst [vmem:[%s1161_s22 + $0x58] sm:$0xff] %v295_v11  ;;  %v297_v12 = vld [vmem:[%s1156_s21 + $0x300] sm:$0xff] }
  0x36   : > { %v299_v13 = vld [vmem:[%s1156_s21 + $0x340] sm:$0xff]  ;;  %298 = vst [vmem:[%s1161_s22 + $0x60] sm:$0xff] %v297_v12 }
  0x37   : > { %v301_v14 = vld [vmem:[%s1156_s21 + $0x380] sm:$0xff]  ;;  %300 = vst [vmem:[%s1161_s22 + $0x68] sm:$0xff] %v299_v13 }
  0x38   : > { %302 = vst [vmem:[%s1161_s22 + $0x70] sm:$0xff] %v301_v14  ;;  %v303_v15 = vld [vmem:[%s1156_s21 + $0x3c0] sm:$0xff] }
  0x39   : > { %v305_v16 = vld [vmem:[%s1156_s21 + $0x400] sm:$0xff]  ;;  %304 = vst [vmem:[%s1161_s22 + $0x78] sm:$0xff] %v303_v15 }
  0x3a   : > { %v307_v17 = vld [vmem:[%s1156_s21 + $0x440] sm:$0xff]  ;;  %306 = vst [vmem:[%s1161_s22 + $0x80] sm:$0xff] %v305_v16 }
  0x3b   : > { %308 = vst [vmem:[%s1161_s22 + $0x88] sm:$0xff] %v307_v17  ;;  %v309_v18 = vld [vmem:[%s1156_s21 + $0x480] sm:$0xff] }
  0x3c   : > { %v311_v19 = vld [vmem:[%s1156_s21 + $0x4c0] sm:$0xff]  ;;  %310 = vst [vmem:[%s1161_s22 + $0x90] sm:$0xff] %v309_v18 }
  0x3d   : > { %v313_v20 = vld [vmem:[%s1156_s21 + $0x500] sm:$0xff]  ;;  %312 = vst [vmem:[%s1161_s22 + $0x98] sm:$0xff] %v311_v19 }
  0x3e   : > { %314 = vst [vmem:[%s1161_s22 + $0xa0] sm:$0xff] %v313_v20  ;;  %v315_v21 = vld [vmem:[%s1156_s21 + $0x540] sm:$0xff] }
  0x3f   : > { %v317_v22 = vld [vmem:[%s1156_s21 + $0x580] sm:$0xff]  ;;  %316 = vst [vmem:[%s1161_s22 + $0xa8] sm:$0xff] %v315_v21 }
  0x40   : > { %v319_v23 = vld [vmem:[%s1156_s21 + $0x5c0] sm:$0xff]  ;;  %318 = vst [vmem:[%s1161_s22 + $0xb0] sm:$0xff] %v317_v22 }
  0x41   : > { %320 = vst [vmem:[%s1161_s22 + $0xb8] sm:$0xff] %v319_v23 }
  0x42 PF: > { %326 = sbr.rel (!%p1131_p10) target bundleno = 76 (0x4c), region = 58  ;;  %s328_s6 = sand.u32 (%p1131_p10), 1, %s1029_s24  }
  0x43   : > { %s911_s7 = smul.u32 (%p1131_p10), 12, %s1045_s27 }
  0x44   : > { %s910_s10 = smul.u32 (%p1131_p10), 24, %s328_s6 }
  0x45   : > { %s332_s11 = sadd.s32 (%p1131_p10), %s1041_s26, %s911_s7 }
  0x46   : > { %s870_s12 = sshll.u32 (%p1131_p10), %s332_s11, 3  ;;  %s330_s17 = scalar_lea.vmem (%p1131_p10), [#allocation5], %s910_s10 }
  0x47   : > { %s334_s16 = scalar_lea.vmem (%p1131_p10), %s1354_s2, %s870_s12 }
  0x48   : > { %v366_v24 = vld [vmem:[%s334_s16] sm:$0xff] (%p1131_p10) }
  0x49   : > { %v368_v25 = vld [vmem:[%s334_s16 + $0x20] sm:$0xff]  ;;  %367 = vst [vmem:[%s330_s17] sm:$0xff] %v366_v24 }
  0x4a   : > { %v370_v26 = vld [vmem:[%s334_s16 + $0x40] sm:$0xff]  ;;  %369 = vst [vmem:[%s330_s17 + $0x8] sm:$0xff] %v368_v25 }
  0x4b   : > { %371 = vst [vmem:[%s330_s17 + $0x10] sm:$0xff] %v370_v26 }
  0x4c PF: > { %p871_p0 = scmp.ge.s32.totalorder %s1049_s28, 1  ;;  %p376_p1 = scmp.lt.s32.totalorder %s1049_s28, 9 }
  0x4e   : > { %p377_p2 = pnand %p871_p0, %p376_p1 }
  0x4f   : > { %s1219_s8 = sand.u32 (!%p377_p2), 1, %s1025_s23   ;;  %s1229_s21 = sshll.u32 (!%p377_p2), %s1037_s0, 7 }
  0x50   : > { %380 = sbr.rel (%p377_p2) target bundleno = 176 (0xb0), region = 96  ;;  %s872_s22 = sshll.u32 (!%p377_p2), %s1219_s8, 4 }
  0x51   : > { %s912_s18 = smul.u32 (!%p377_p2), 192, %s1219_s8  ;;  %s1248_s6 = sld [smem:[#allocation3 + %s1229_s21]] (!%p377_p2) }
  0x52   : > { %s913_s19 = smul.u32 (!%p377_p2), 24, %s1219_s8  ;;  %s452_s7 = sadd.s32 (!%p377_p2), 1, %s1229_s21 }
  0x53   : > { %s1223_s20 = scalar_lea.vmem (!%p377_p2), [#allocation4], %s912_s18  ;;  %s1260_s10 = sld [smem:[#allocation3 + %s452_s7]] (!%p377_p2) }
  0x54   : > { %v897_v27 = vld [vmem:[%s1223_s20 + $0x30] sm:$0xff] (!%p377_p2)  ;;  %s392_s23 = scalar_lea.vmem (!%p377_p2), [#allocation5], %s913_s19  ;;  %v900_v36 = vld [vmem:[%s1223_s20 + $0x38] sm:$0xff] (!%p377_p2)  ;;  %v469_v42 = vld [vmem:[%s1223_s20] sm:$0xff] (!%p377_p2)  ;;  %s454_s11 = sadd.s32 (!%p377_p2), 2, %s1229_s21 }
  0x55   : > { %v898_v28 = vld [vmem:[%s1223_s20 + $0x70] sm:$0xff] (!%p377_p2)  ;;  %v1231_v30 = vld [vmem:[%s392_s23] sm:$0xff] (!%p377_p2)  ;;  %v1233_v31 = vld [vmem:[%s392_s23 + $0x8] sm:$0xff] (!%p377_p2)  ;;  %s1274_s12 = sld [smem:[#allocation3 + %s454_s11]] (!%p377_p2)  ;;  %s1283_s14 = scalar_lea.vmem (!%p377_p2), [#allocation6], %s872_s22 }
  0x56   : > { %v899_v29 = vld [vmem:[%s1223_s20 + $0xb0] sm:$0xff] (!%p377_p2)  ;;  %v536_v33 = vmul.f32 (!%p377_p2), %v897_v27, %v1231_v30  ;;  %v539_v34 = vmul.f32 (!%p377_p2), %v898_v28, %v1233_v31  ;;  %v901_v37 = vld [vmem:[%s1223_s20 + $0x78] sm:$0xff] (!%p377_p2)  ;;  %v548_v39 = vmul.f32 (!%p377_p2), %v900_v36, %v1231_v30  ;;  %v880_v43 = vld [vmem:[%s1223_s20 + $0x40] sm:$0xff] (!%p377_p2)  ;;  %v470_v46 = vmul.f32 (!%p377_p2), %v469_v42, %v1231_v30  ;;  %s456_s15 = sadd.s32 (!%p377_p2), 3, %s1229_s21  ;;  %s458_s16 = sadd.s32 (!%p377_p2), 4, %s1229_s21 }
  0x57   : > { %v1235_v32 = vld [vmem:[%s392_s23 + $0x10] sm:$0xff]  ;;  %v902_v38 = vld [vmem:[%s1223_s20 + $0xb8] sm:$0xff]  ;;  %v551_v40 = vmul.f32 %v901_v37, %v1233_v31  ;;  %v881_v44 = vld [vmem:[%s1223_s20 + $0x80] sm:$0xff]  ;;  %v473_v47 = vmul.f32 %v880_v43, %v1233_v31  ;;  %v569_v26 = vstv %s1248_s6  ;;  %s457_s17 = sld [smem:[#allocation3 + %s456_s15]]  ;;  %s460_s18 = sadd.s32 5, %s1229_s21 }
  0x58   : > { %v543_v35 = vmul.f32 %v899_v29, %v1235_v32  ;;  %v555_v41 = vmul.f32 %v902_v38, %v1235_v32  ;;  %v540_v45 = vadd.f32 %v539_v34, %v536_v33  ;;  %v477_v48 = vmul.f32 %v881_v44, %v1235_v32  ;;  %v882_v49 = vld [vmem:[%s1223_s20 + $0x8] sm:$0xff]  ;;  %v885_v56 = vld [vmem:[%s1223_s20 + $0x10] sm:$0xff]  ;;  %v888_v63 = vld [vmem:[%s1223_s20 + $0x18] sm:$0xff]  ;;  %s459_s8 = sld [smem:[#allocation3 + %s458_s16]]  ;;  %p434_p3 = scmp.lt.s32.totalorder %s1037_s0, 1 }
  0x59   : > { %v883_v50 = vld [vmem:[%s1223_s20 + $0x48] sm:$0xff]  ;;  %v552_v52 = vadd.f32 %v551_v40, %v548_v39  ;;  %v481_v53 = vmul.f32 %v882_v49, %v1231_v30  ;;  %v886_v57 = vld [vmem:[%s1223_s20 + $0x50] sm:$0xff]  ;;  %v474_v60 = vadd.f32 %v473_v47, %v470_v46  ;;  %v492_v61 = vmul.f32 %v885_v56, %v1231_v30  ;;  %v889_v0 = vld [vmem:[%s1223_s20 + $0x58] sm:$0xff]  ;;  %s461_s19 = sld [smem:[#allocation3 + %s460_s18]]  ;;  %p436_p4 = scmp.lt.s32.totalorder %s1033_s25, 3 }
  0x5a   : > { %v884_v51 = vld [vmem:[%s1223_s20 + $0x88] sm:$0xff]  ;;  %v484_v54 = vmul.f32 %v883_v50, %v1233_v31  ;;  %v887_v58 = vld [vmem:[%s1223_s20 + $0x90] sm:$0xff]  ;;  %v544_v59 = vadd.f32 %v543_v35, %v540_v45  ;;  %v495_v62 = vmul.f32 %v886_v57, %v1233_v31  ;;  %v890_v1 = vld [vmem:[%s1223_s20 + $0x98] sm:$0xff]  ;;  %v503_v5 = vmul.f32 %v888_v63, %v1231_v30  ;;  %s462_s15 = sadd.s32 15, %s1229_s21  ;;  %s905_s21 = sshll.u32 (%p1137_p11), %s1037_s0, 3 }
  0x5b   : > { %v488_v55 = vmul.f32 %v884_v51, %v1235_v32  ;;  %v556_v2 = vadd.f32 %v555_v41, %v552_v52  ;;  %v499_v4 = vmul.f32 %v887_v58, %v1235_v32  ;;  %v891_v6 = vld [vmem:[%s1223_s20 + $0x20] sm:$0xff]  ;;  %v478_v9 = vadd.f32 %v477_v48, %v474_v60  ;;  %v894_v13 = vld [vmem:[%s1223_s20 + $0x28] sm:$0xff]  ;;  %s437_s23 = scalar_select %p436_p4, %s1033_s25, 3 }
  0x5c   : > { %v485_v3 = vadd.f32 %v484_v54, %v481_v53  ;;  %v892_v7 = vld [vmem:[%s1223_s20 + $0x60] sm:$0xff]  ;;  %545 = vst [vmem:[%s1283_s14] sm:$0xff] %v544_v59  ;;  %v496_v10 = vadd.f32 %v495_v62, %v492_v61  ;;  %v506_v11 = vmul.f32 %v889_v0, %v1233_v31  ;;  %v510_v12 = vmul.f32 %v890_v1, %v1235_v32  ;;  %v895_v14 = vld [vmem:[%s1223_s20 + $0x68] sm:$0xff]  ;;  %s463_s16 = sld [smem:[#allocation3 + %s462_s15]] }
  0x5d   : > { %v893_v8 = vld [vmem:[%s1223_s20 + $0xa0] sm:$0xff]  ;;  %v896_v15 = vld [vmem:[%s1223_s20 + $0xa8] sm:$0xff]  ;;  %903 = vst [vmem:[%s1283_s14 + $0x8] sm:$0xff] %v556_v2  ;;  %v514_v17 = vmul.f32 %v891_v6, %v1231_v30  ;;  %v517_v18 = vmul.f32 %v892_v7, %v1233_v31  ;;  %v525_v22 = vmul.f32 %v894_v13, %v1231_v30  ;;  %v528_v23 = vmul.f32 %v895_v14, %v1233_v31  ;;  %s435_s20 = scalar_select %p434_p3, %s1037_s0, 1 }
  0x5e   : > { %v489_v16 = vadd.f32 %v488_v55, %v485_v3  ;;  %v521_v19 = vmul.f32 %v893_v8, %v1235_v32  ;;  %v500_v20 = vadd.f32 %v499_v4, %v496_v10  ;;  %v507_v21 = vadd.f32 %v506_v11, %v503_v5 }
  0x5f   : > { %v518_v24 = vadd.f32 %v517_v18, %v514_v17  ;;  %v532_v25 = vmul.f32 %v896_v15, %v1235_v32  ;;  %v571_v27 = vstv %s1260_s10  ;;  %v529_v29 = vadd.f32 %v528_v23, %v525_v22  ;;  %s873_s22 = sshll.u32 %s435_s20, 2 }
  0x60   : > { %v511_v28 = vadd.f32 %v510_v12, %v507_v21  ;;  %v570_v33 = vsub.f32 %v569_v26, %v478_v9  ;;  %v572_v34 = vsub.f32 %v571_v27, %v489_v16  ;;  %v573_v36 = vstv %s1274_s12  ;;  %s1308_s6 = sadd.s32 %s873_s22, %s437_s23 }
  0x61   : > { %v522_v35 = vadd.f32 %v521_v19, %v518_v24  ;;  %v533_v37 = vadd.f32 %v532_v25, %v529_v29  ;;  %v574_v39 = vsub.f32 %v573_v36, %v500_v20  ;;  %v599_v46 = vstv %s457_s17  ;;  %s874_s7 = sshll.u32 %s1308_s6, 3 }
  0x62   : > { %v559_v38 = vmul.f32 %v511_v28, %v511_v28  ;;  %v575_v30 = vmul.f32 %v570_v33, %v570_v33  ;;  %v576_v31 = vmul.f32 %v572_v34, %v572_v34  ;;  %v601_v47 = vstv %s459_s8  ;;  %s441_s12 = scalar_lea.vmem %s1356_s4, %s874_s7  ;;  %s449_s18 = scalar_lea.vmem %s1357_s5, %s874_s7 }
  0x63   : > { %v560_v40 = vmul.f32 %v522_v35, %v522_v35  ;;  %v562_v32 = vmul.f32 %v533_v37, %v533_v37  ;;  %v578_v41 = vmul.f32 %v574_v39, %v574_v39  ;;  %v600_v50 = vsub.f32 %v599_v46, %v478_v9 }
  0x64   : > { %v577_v43 = vadd.f32 %v576_v31, %v575_v30  ;;  %v602_v51 = vsub.f32 %v601_v47, %v489_v16  ;;  %v603_v52 = vstv %s461_s19  ;;  %s655_s19 = sadd.s32 (%p1137_p11), %s1033_s25, %s905_s21 }
  0x65   : > { %v561_v42 = vadd.f32 %v560_v40, %v559_v38  ;;  %v604_v53 = vsub.f32 %v603_v52, %v500_v20  ;;  %v605_v54 = vmul.f32 %v600_v50, %v600_v50  ;;  %v689_v38 = vld [vmem:[%s1283_s14 + $0x8] sm:$0xff] (%p1137_p11)  ;;  %s906_s20 = sshll.u32 (%p1137_p11), %s655_s19, 3 }
  0x66   : > { %v579_v45 = vadd.f32 %v578_v41, %v577_v43  ;;  %v606_v55 = vmul.f32 %v602_v51, %v602_v51  ;;  %s657_s6 = scalar_lea.vmem (%p1137_p11), %s1355_s3, %s906_s20 }
  0x67   : > { %v563_v44 = vadd.f32 %v562_v32, %v561_v42  ;;  %v608_v57 = vmul.f32 %v604_v53, %v604_v53  ;;  %690 = vst [vmem:[%s657_s6 + $0x20] sm:$0xff] (%p1137_p11), %v689_v38 }
  0x68   : > { %v580_v49 = vmax.f32 %v579_v45, 1e-12  ;;  %v607_v56 = vadd.f32 %v606_v55, %v605_v54 }
  0x69   : > { %v564_v48 = vmax.f32 %v563_v44, 1e-12 }
  0x6a   : > { %v609_v63 = vadd.f32 %v608_v57, %v607_v56 }
  0x6b   : > { %971 = vrsqrt.f32 %v564_v48 }
  0x6c   : > { %973 = vrsqrt.f32 %v580_v49  ;;  %v610_v6 = vmax.f32 %v609_v63, 1e-12 }
  0x6e   : > { %975 = vrsqrt.f32 %v610_v6 }
  0x75   : > { %v972_v58 = vpop.eup %971 }
  0x76   : > { %v974_v59 = vpop.eup %973  ;;  %v566_v60 = vmul.f32 %v972_v58, %v511_v28  ;;  %v567_v61 = vmul.f32 %v972_v58, %v522_v35  ;;  %v568_v62 = vmul.f32 %v972_v58, %v533_v37  ;;  %v625_v28 = vstv %s463_s16  ;;  %v687_v37 = vld [vmem:[%s1283_s14] sm:$0xff] (%p1137_p11) }
  0x77   : > { %v582_v0 = vmul.f32 %v974_v59, %v570_v33  ;;  %v583_v1 = vmul.f32 %v974_v59, %v572_v34  ;;  %v584_v2 = vmul.f32 %v974_v59, %v574_v39  ;;  %688 = vst [vmem:[%s657_s6] sm:$0xff] (%p1137_p11), %v687_v37 }
  0x78   : > { %v976_v21 = vpop.eup %975 }
  0x79   : > { %v585_v3 = vmul.f32 %v582_v0, %v566_v60  ;;  %v586_v4 = vmul.f32 %v583_v1, %v567_v61  ;;  %v588_v5 = vmul.f32 %v584_v2, %v568_v62 }
  0x7b   : > { %v587_v7 = vadd.f32 %v586_v4, %v585_v3 }
  0x7d   : > { %v589_v8 = vadd.f32 %v588_v5, %v587_v7 }
  0x7f   : > { %v590_v9 = vmax.f32 %v589_v8, 0.0  ;;  %v592_v10 = vmul.f32 2.0, %v589_v8  ;;  %vm619_vm0 = vcmp.gt.f32.partialorder %v589_v8, 0.0 }
  0x81   : > { %591 = vst [vmem:[%s441_s12] sm:$0xff] %v590_v9  ;;  %v593_v11 = vmul.f32 %v592_v10, %v566_v60  ;;  %v595_v12 = vmul.f32 %v592_v10, %v567_v61  ;;  %v597_v13 = vmul.f32 %v592_v10, %v568_v62 }
  0x83   : > { %v594_v14 = vsub.f32 %v593_v11, %v582_v0  ;;  %v596_v15 = vsub.f32 %v595_v12, %v583_v1  ;;  %v598_v16 = vsub.f32 %v597_v13, %v584_v2 }
  0x85   : > { %v612_v17 = vmul.f32 %v600_v50, %v594_v14  ;;  %v613_v18 = vmul.f32 %v602_v51, %v596_v15  ;;  %v615_v19 = vmul.f32 %v604_v53, %v598_v16 }
  0x87   : > { %v614_v20 = vadd.f32 %v613_v18, %v612_v17 }
  0x89   : > { %v616_v22 = vadd.f32 %v615_v19, %v614_v20 }
  0x8b   : > { %v617_v23 = vmul.f32 %v976_v21, %v616_v22 }
  0x8d   : > { %v618_v24 = vmax.f32 %v617_v23, 0.0 }
  0x8f   : > { %v620_v25 = vsel %vm619_vm0, %v618_v24, 0.0 }
  0x90   : > { %v622_v26 = vmax.f32 %v620_v25, 1e-30  ;;  %vm621_vm1 = vcmp.gt.f32.partialorder %v620_v25, 0.0 }
  0x92   : > { %977 = vlog2.f32 %v622_v26 }
  0x9c   : > { %v978_v27 = vpop.eup %977 }
  0x9d   : > { %v624_v29 = vmul.f32 0.6931472, %v978_v27 }
  0x9f   : > { %v626_v33 = vmul.f32 %v625_v28, %v624_v29 }
  0xa1   : > { %v627_v34 = vmul.f32 1.442695, %v626_v33 }
  0xa3   : > { %979 = vpow2.f32 %v627_v34 }
  0xa9   : > { %653 = sbr.rel (!%p1137_p11) target bundleno = 176 (0xb0), region = 108 }
  0xad   : > { %v980_v35 = vpop.eup %979 }
  0xae   : > { %v629_v36 = vsel %vm621_vm1, %v980_v35, 0.0 }
  0xaf   : > { %630 = vst [vmem:[%s449_s18] sm:$0xff] %v629_v36 }
  0xb0 PF: > { %s22_s28 = sadd.s32 1, %s1049_s28   ;;  %s1360_s23 = smov %s1029_s24 }
  0xb1   : > { %p19_p5 = scmp.ge.s32.totalorder %s22_s28, 10   ;;  %s1361_s24 = smov %s1145_s13 }
  0xb2   : > { %s1362_s25 = smov %s1041_s26  ;;  %s1363_s0 = smov %s1045_s27 }
  0xb3   : > { %s1364_s26 = smov %s1367_s29  ;;  %s1365_s27 = smov %s1371_s30 }
  0xb4   :  { %21 = sbr.rel (!%p19_p5) target bundleno = 19 (0x13), region = 235 }

// kernel: textured_phong_forward.3
= control target key start
LH: loop header
LB: loop body
LE: loop exit
PB: predicated region body
PF: predicated region fallthrough
CT: control target
= control target key end

     0   :  { %s1254_s0 = inlined_call_operand.vmem [shape: f32[2,24], index: 0, kind: input, shape index: {}]   ;;  %s1255_s1 = inlined_call_operand.vmem [shape: f32[2,4,3,8,128], index: 1, kind: input, shape index: {}]   ;;  %s1256_s2 = inlined_call_operand.vmem [shape: f32[2,4,8,128], index: 2, kind: input, shape index: {}]   ;;  %s1257_s3 = inlined_call_operand.vmem [shape: f32[2,4,8,128], index: 3, kind: input, shape index: {}]   ;;  %s1258_s4 = inlined_call_operand.vmem [shape: f32[2,4,8,128], index: 4, kind: input, shape index: {}]   ;;  %s1259_s5 = inlined_call_operand.vmem [shape: f32[2,4,8,128], index: 5, kind: input, shape index: {}]   ;;  %s1260_s6 = inlined_call_operand.vmem [shape: f32[2,4,8,128], index: 6, kind: output, shape index: {}]  }
   0x1   :  { %s11_s23 = sshll.u32 %s1254_s0, 4  ;;  %s12_s23 = int_to_ptr.vmem [resolvable:$true] %s11_s23 }
   0x2   :  { %s958_s24 = scalar_lea.vmem %s12_s23, 32  ;;  %p963_p1 = scmp.lt.s32.totalorder %s12_s23, %s12_s23 }
   0x3   :  { %p959_p0 = scmp.ne.s32.totalorder %s12_s23, %s958_s24  ;;  %p964_p2 = scmp.lt.s32.totalorder %s958_s24, %s958_s24 }
   0x5   :  { %p965_p3 = por %p964_p2, %p963_p1 }
   0x7   :  { %p966_p4 = pnand %p965_p3, %p959_p0 }
   0x9   :  { %969 = shalt.err (!%p966_p4)  }
   0xa   :  { %s996_s25 = smov [#allocation4]  }
   0xb   :  { %14 = dma.vmem_to_smem %s12_s23, 32, %s996_s25, [#allocation3] }
   0xc   :  { %982 = dma.done.wait [#allocation3], 32 }
   0xd   :  { %983 = vsyncadd [#allocation3], 4294967264 }
   0xe   :  { %16 = sfence }
   0xf   :  { %s1035_s26 = smov 0   ;;  %s1037_s27 = smov 0  }
  0x10   :  { %s1039_s28 = smov 0  }
  0x11 LB: > { %s34_s0 = sadd.s32 1, %s990_s27  ;;  %p848_p5 = scmp.ge.s32.totalorder %s994_s28, 1  ;;  %s994_s28 = sphi %s1039_s28, %s22_s28   ;;  %s990_s27 = sphi %s1037_s27, %s1262_s27   ;;  %s986_s26 = sphi %s1035_s26, %s1261_s26  }
  0x12   : > { %p36_p6 = scmp.ge.s32.totalorder %s34_s0, 2  ;;  %p273_p7 = scmp.lt.s32.totalorder %s994_s28, 3 }
  0x14   : > { %s1264_s0 = smov (%p36_p6, %s34_s0), 0  ;;  %p274_p8 = pnand %p848_p5, %p273_p7 }
  0x15   : > { %s1056_s29 = sshll.u32 (!%p274_p8), %s986_s26, 7  ;;  %p339_p9 = scmp.lt.s32.totalorder (!%p274_p8), %s986_s26, 1 }
  0x16   : > { %277 = sbr.rel (%p274_p8) target bundleno = 145 (0x91), region = 40  ;;  %s412_s30 = sadd.s32 (!%p274_p8), 19, %s1056_s29 }
  0x17   : > { %s414_s7 = sadd.s32 (!%p274_p8), 20, %s1056_s29  ;;  %s413_s8 = sld [smem:[#allocation4 + %s412_s30]] (!%p274_p8) }
  0x18   : > { %s415_s9 = sld [smem:[#allocation4 + %s414_s7]] (!%p274_p8)  ;;  %s416_s10 = sadd.s32 (!%p274_p8), 21, %s1056_s29 }
  0x19   : > { %s418_s11 = sadd.s32 (!%p274_p8), 22, %s1056_s29  ;;  %s417_s12 = sld [smem:[#allocation4 + %s416_s10]] (!%p274_p8) }
  0x1a   : > { %s419_s13 = sld [smem:[#allocation4 + %s418_s11]] (!%p274_p8)  ;;  %s394_s22 = sadd.s32 (!%p274_p8), 9, %s1056_s29 }
  0x1b   : > { %s1081_s23 = sld [smem:[#allocation4 + %s394_s22]] (!%p274_p8)  ;;  %s396_s24 = sadd.s32 (!%p274_p8), 10, %s1056_s29 }
  0x1c   : > { %s398_s25 = sadd.s32 (!%p274_p8), 11, %s1056_s29  ;;  %s388_s7 = sadd.s32 (!%p274_p8), 6, %s1056_s29 }
  0x1d   : > { %v420_v0 = vstv %s413_s8  ;;  %s1266_s26 = smov (!%p339_p9, %s986_s26), 1  ;;  %s392_s10 = sadd.s32 8, %s1056_s29 }
  0x1e   : > { %v423_v1 = vstv %s415_s9  ;;  %924 = vrcp.f32 %v420_v0  ;;  %s1067_s15 = sshll.u32 %s1266_s26, 5  ;;  %s390_s9 = sadd.s32 7, %s1056_s29 }
  0x1f   : > { %926 = vrcp.f32 %v423_v1  ;;  %s370_s18 = scalar_lea.vmem %s1258_s4, %s1067_s15  ;;  %s378_s21 = scalar_lea.vmem %s1259_s5, %s1067_s15 }
  0x20   : > { %s426_s14 = ssub.f32 %s419_s13, %s417_s12  ;;  %v435_v5 = vld [vmem:[%s370_s18] sm:$0xff]  ;;  %v436_v6 = vstv %s419_s13  ;;  %v862_v7 = vld [vmem:[%s370_s18 + $0x8] sm:$0xff]  ;;  %v864_v11 = vld [vmem:[%s370_s18 + $0x10] sm:$0xff]  ;;  %s1090_s11 = sld [smem:[#allocation4 + %s396_s24]] }
  0x21   : > { %v437_v8 = vsub.f32 %v436_v6, %v435_v5  ;;  %v455_v9 = vsub.f32 %v436_v6, %v862_v7  ;;  %v474_v14 = vsub.f32 %v436_v6, %v864_v11  ;;  %v866_v15 = vld [vmem:[%s370_s18 + $0x18] sm:$0xff]  ;;  %v427_v22 = vld [vmem:[%s378_s21] sm:$0xff]  ;;  %v861_v23 = vld [vmem:[%s378_s21 + $0x8] sm:$0xff]  ;;  %s1092_s12 = sld [smem:[#allocation4 + %s398_s25]]  ;;  %s1100_s16 = scalar_lea.vmem %s1256_s2, %s1067_s15  ;;  %v525_v44 = vstv %s1081_s23 }
  0x22   : > { %v438_v4 = vstv %s426_s14  ;;  %v493_v18 = vsub.f32 %v436_v6, %v866_v15  ;;  %v863_v24 = vld [vmem:[%s378_s21 + $0x10] sm:$0xff]  ;;  %v865_v25 = vld [vmem:[%s378_s21 + $0x18] sm:$0xff]  ;;  %s1102_s17 = sld [smem:[#allocation4 + %s388_s7]]  ;;  %s400_s20 = sadd.s32 12, %s1056_s29  ;;  %v523_v43 = vld [vmem:[%s1100_s16] sm:$0xff] }
  0x23   : > { %928 = vrcp.f32 %v438_v4  ;;  %s1105_s18 = sld [smem:[#allocation4 + %s390_s9]]  ;;  %s402_s21 = sadd.s32 13, %s1056_s29  ;;  %v869_v45 = vld [vmem:[%s1100_s16 + $0x8] sm:$0xff]  ;;  %v526_v49 = vmul.f32 %v525_v44, %v523_v43  ;;  %v1122_v51 = vld [vmem:[%s1100_s16 + $0x10] sm:$0xff]  ;;  %v1135_v56 = vld [vmem:[%s1100_s16 + $0x18] sm:$0xff] }
  0x24   : > { %s1107_s19 = sld [smem:[#allocation4 + %s392_s10]]  ;;  %s404_s22 = sadd.s32 14, %s1056_s29  ;;  %v572_v50 = vmul.f32 %v869_v45, %v525_v44  ;;  %v611_v62 = vmul.f32 %v1122_v51, %v525_v44  ;;  %v1162_v1 = vmul.f32 %v1135_v56, %v525_v44 }
  0x25   : > { %s1116_s24 = sld [smem:[#allocation4 + %s400_s20]]  ;;  %s408_s13 = sadd.s32 17, %s1056_s29 }
  0x26   : > { %s1118_s25 = sld [smem:[#allocation4 + %s402_s21]]  ;;  %v1127_v53 = vstv %s1090_s11  ;;  %s410_s14 = sadd.s32 18, %s1056_s29 }
  0x27   : > { %s1124_s23 = sld [smem:[#allocation4 + %s404_s22]]  ;;  %v1130_v54 = vstv %s1092_s12  ;;  %s406_s12 = sadd.s32 16, %s1056_s29  ;;  %v537_v63 = vmul.f32 %v1127_v53, %v523_v43 }
  0x28   : > { %v925_v2 = vpop.eup %924  ;;  %v1138_v57 = vstv %s1102_s17  ;;  %v549_v0 = vmul.f32 %v1130_v54, %v523_v43  ;;  %s1170_s16 = sld [smem:[#allocation4 + %s406_s12]]  ;;  %v629_v43 = vmul.f32 %v1122_v51, %v1130_v54  ;;  %s1239_s20 = scalar_lea.vmem %s1260_s6, %s1067_s15 }
  0x29   : > { %v927_v3 = vpop.eup %926  ;;  %895 = vpush %v925_v2  ;;  %v1147_v59 = vstv %s1105_s18  ;;  %v573_v4 = vadd.f32 %v572_v50, %v1138_v57  ;;  %s1179_s29 = sld [smem:[#allocation4 + %s408_s13]] }
  0x2a   : > { %897 = vpush %v927_v3  ;;  %v1150_v60 = vstv %s1107_s19  ;;  %v528_v3 = vadd.f32 %v1138_v57, %v526_v49  ;;  %s1181_s17 = sld [smem:[#allocation4 + %s410_s14]] }
  0x2d   : > { %v929_v10 = vpop.eup %928 }
  0x2e   : > { %v440_v12 = vmul.f32 %v929_v10, %v437_v8  ;;  %v456_v13 = vmul.f32 %v929_v10, %v455_v9  ;;  %v475_v17 = vmul.f32 %v929_v10, %v474_v14  ;;  %v1073_v20 = vmul.f32 %v929_v10, %v493_v18 }
  0x2f   : > { %v581_v8 = vmul.f32 %v869_v45, %v1127_v53  ;;  %v590_v9 = vmul.f32 %v869_v45, %v1130_v54  ;;  %v1177_v14 = vstv %s1118_s25  ;;  %v539_v18 = vadd.f32 %v1147_v59, %v537_v63 }
  0x30   : > { %v463_v16 = vmax.f32 %v440_v12, %v456_v13  ;;  %v509_v50 = vstv %s1170_s16  ;;  %v513_v63 = vstv %s1181_s17 }
  0x32   : > { %v482_v19 = vmax.f32 %v463_v16, %v475_v17 }
  0x34   : > { %v501_v21 = vmax.f32 %v482_v19, %v1073_v20  ;;  %v551_v19 = vadd.f32 %v1150_v60, %v549_v0 }
  0x36   : > { %v1084_v26 = vmax.f32 %v501_v21, 1e-10 }
  0x38   : > { %v503_v32 = vsub.f32 1e-10, %v1084_v26  ;;  %v517_v33 = vsub.f32 %v440_v12, %v1084_v26  ;;  %v562_v39 = vsub.f32 %v456_v13, %v1084_v26  ;;  %v601_v40 = vsub.f32 %v475_v17, %v1084_v26 }
  0x39   : > { %v640_v55 = vsub.f32 %v1073_v20, %v1084_v26  ;;  %v1174_v13 = vstv %s1116_s24 }
  0x5a   : > { %s896_s30 = spop %895 }
  0x5b   : > { %s898_s8 = spop %897  ;;  %v428_v27 = vstv %s896_s30  ;;  %s894_s30 = smul.u32 96, %s1266_s26 }
  0x5c   : > { %v429_v28 = vmul.f32 %v428_v27, %v427_v22  ;;  %v447_v29 = vmul.f32 %v861_v23, %v428_v27  ;;  %v466_v30 = vmul.f32 %v863_v24, %v428_v27  ;;  %v485_v31 = vmul.f32 %v865_v25, %v428_v27 }
  0x5d   : > { %v504_v37 = vstv %s898_s8  ;;  %s1144_s8 = scalar_lea.vmem %s1257_s3, %s1067_s15  ;;  %s1156_s11 = scalar_lea.vmem %s1255_s1, %s894_s30  ;;  %v1188_v22 = vstv %s1124_s23 }
  0x5e   : > { %v430_v34 = vmul.f32 1.442695, %v429_v28  ;;  %v448_v35 = vmul.f32 1.442695, %v447_v29  ;;  %v467_v36 = vmul.f32 1.442695, %v466_v30  ;;  %v505_v41 = vmul.f32 %v504_v37, %v503_v32 }
  0x5f   : > { %v486_v38 = vmul.f32 1.442695, %v485_v31  ;;  %v518_v42 = vmul.f32 %v517_v33, %v504_v37  ;;  %v563_v46 = vmul.f32 %v562_v39, %v504_v37  ;;  %v602_v47 = vmul.f32 %v601_v40, %v504_v37  ;;  %v529_v12 = vld [vmem:[%s1156_s11] sm:$0xff]  ;;  %v867_v21 = vld [vmem:[%s1156_s11 + $0x8] sm:$0xff]  ;;  %v871_v23 = vld [vmem:[%s1156_s11 + $0x18] sm:$0xff] }
  0x60   : > { %930 = vpow2.f32 %v430_v34  ;;  %v506_v48 = vmul.f32 1.442695, %v505_v41  ;;  %v641_v5 = vmul.f32 %v640_v55, %v504_v37  ;;  %v524_v17 = vld [vmem:[%s1144_s8] sm:$0xff]  ;;  %v530_v25 = vmul.f32 %v529_v12, %v528_v3  ;;  %v868_v26 = vld [vmem:[%s1156_s11 + $0x10] sm:$0xff]  ;;  %v870_v27 = vld [vmem:[%s1144_s8 + $0x8] sm:$0xff] }
  0x61   : > { %932 = vpow2.f32 %v448_v35  ;;  %v519_v52 = vmul.f32 1.442695, %v518_v42  ;;  %v564_v58 = vmul.f32 1.442695, %v563_v46  ;;  %v603_v61 = vmul.f32 1.442695, %v602_v47 }
  0x62   : > { %934 = vpow2.f32 %v467_v36  ;;  %v642_v24 = vmul.f32 1.442695, %v641_v5  ;;  %v582_v28 = vadd.f32 %v581_v8, %v1147_v59  ;;  %v591_v29 = vadd.f32 %v590_v9, %v1150_v60  ;;  %v872_v32 = vld [vmem:[%s1156_s11 + $0x20] sm:$0xff]  ;;  %v873_v33 = vld [vmem:[%s1156_s11 + $0x28] sm:$0xff]  ;;  %v876_v39 = vld [vmem:[%s1156_s11 + $0x30] sm:$0xff] }
  0x63   : > { %936 = vpow2.f32 %v486_v38  ;;  %v532_v30 = vmul.f32 %v1174_v13, %v524_v17  ;;  %v544_v31 = vmul.f32 %v1177_v14, %v524_v17  ;;  %v612_v34 = vadd.f32 %v611_v62, %v1138_v57  ;;  %v875_v38 = vld [vmem:[%s1144_s8 + $0x10] sm:$0xff]  ;;  %v878_v12 = vld [vmem:[%s1156_s11 + $0x40] sm:$0xff] }
  0x64   : > { %938 = vpow2.f32 %v506_v48  ;;  %v542_v35 = vmul.f32 %v867_v21, %v539_v18  ;;  %v556_v36 = vmul.f32 %v1188_v22, %v524_v17  ;;  %v576_v37 = vmul.f32 %v871_v23, %v573_v4 }
  0x65   : > { %940 = vpow2.f32 %v519_v52  ;;  %v620_v40 = vmul.f32 %v1122_v51, %v1127_v53  ;;  %v554_v41 = vmul.f32 %v868_v26, %v551_v19  ;;  %v577_v42 = vmul.f32 %v870_v27, %v1174_v13 }
  0x66   : > { %942 = vpow2.f32 %v564_v58  ;;  %v585_v45 = vmul.f32 %v872_v32, %v582_v28  ;;  %v586_v46 = vmul.f32 %v870_v27, %v1177_v14  ;;  %v594_v47 = vmul.f32 %v873_v33, %v591_v29 }
  0x67   : > { %944 = vpow2.f32 %v603_v61  ;;  %v595_v48 = vmul.f32 %v870_v27, %v1188_v22  ;;  %v533_v52 = vadd.f32 %v532_v30, %v530_v25  ;;  %v615_v55 = vmul.f32 %v876_v39, %v612_v34 }
  0x68   : > { %v616_v58 = vmul.f32 %v875_v38, %v1174_v13  ;;  %v511_v62 = vstv %s1179_s29  ;;  %v545_v51 = vadd.f32 %v544_v31, %v542_v35  ;;  %v621_v0 = vadd.f32 %v620_v40, %v1147_v59  ;;  %v881_v35 = vld [vmem:[%s1156_s11 + $0x48] sm:$0xff] }
  0x69   : > { %v557_v4 = vadd.f32 %v556_v36, %v554_v41  ;;  %v578_v5 = vadd.f32 %v577_v42, %v576_v37  ;;  %v587_v9 = vadd.f32 %v586_v46, %v585_v45  ;;  %v659_v25 = vmul.f32 %v1135_v56, %v1127_v53 }
  0x6a   : > { %v931_v2 = vpop.eup %930  ;;  %v617_v19 = vadd.f32 %v616_v58, %v615_v55  ;;  %v668_v26 = vmul.f32 %v1135_v56, %v1130_v54 }
  0x6b   : > { %v933_v6 = vpop.eup %932  ;;  %v432_v7 = vadd.f32 1.0, %v931_v2  ;;  %v660_v41 = vadd.f32 %v659_v25, %v1147_v59 }
  0x6c   : > { %v935_v10 = vpop.eup %934  ;;  %v450_v11 = vadd.f32 1.0, %v933_v6  ;;  %v877_v6 = vld [vmem:[%s1156_s11 + $0x38] sm:$0xff]  ;;  %v669_v46 = vadd.f32 %v668_v26, %v1150_v60 }
  0x6d   : > { %v937_v15 = vpop.eup %936  ;;  %946 = vrcp.f32 %v432_v7  ;;  %v469_v16 = vadd.f32 1.0, %v935_v10  ;;  %v630_v7 = vadd.f32 %v629_v43, %v1150_v60  ;;  %v596_v10 = vadd.f32 %v595_v48, %v594_v47 }
  0x6e   : > { %948 = vrcp.f32 %v450_v11  ;;  %v488_v20 = vadd.f32 1.0, %v937_v15  ;;  %v939_v44 = vpop.eup %938  ;;  %v625_v11 = vmul.f32 %v875_v38, %v1177_v14  ;;  %v634_v15 = vmul.f32 %v875_v38, %v1188_v22 }
  0x6f   : > { %950 = vrcp.f32 %v469_v16  ;;  %v941_v49 = vpop.eup %940  ;;  %v508_v3 = vmax.f32 %v939_v44, 1e-10  ;;  %v633_v31 = vmul.f32 %v878_v12, %v630_v7  ;;  %v882_v44 = vld [vmem:[%s1156_s11 + $0x50] sm:$0xff] }
  0x70   : > { %952 = vrcp.f32 %v488_v20  ;;  %v943_v61 = vpop.eup %942  ;;  %v651_v20 = vadd.f32 %v1162_v1, %v1138_v57  ;;  %v880_v1 = vld [vmem:[%s1144_s8 + $0x18] sm:$0xff] }
  0x71   : > { %954 = vpow2.f32 %v642_v24  ;;  %v945_v2 = vpop.eup %944  ;;  %v624_v24 = vmul.f32 %v877_v6, %v621_v0  ;;  %v510_v28 = vmul.f32 %v509_v50, %v508_v3  ;;  %v512_v34 = vmul.f32 %v511_v62, %v508_v3  ;;  %v883_v50 = vld [vmem:[%s1156_s11 + $0x58] sm:$0xff] }
  0x72   : > { %v514_v57 = vmul.f32 %v513_v63, %v508_v3  ;;  %v654_v42 = vmul.f32 %v881_v35, %v651_v20  ;;  %v655_v43 = vmul.f32 %v880_v1, %v1174_v13  ;;  %v664_v45 = vmul.f32 %v880_v1, %v1177_v14 }
  0x73   : > { %v626_v58 = vadd.f32 %v625_v11, %v624_v24  ;;  %v663_v62 = vmul.f32 %v882_v44, %v660_v41 }
  0x74   : > { %v656_v6 = vadd.f32 %v655_v43, %v654_v42 }
  0x75   : > { %v665_v7 = vadd.f32 %v664_v45, %v663_v62 }
  0x77   : > { %v947_v8 = vpop.eup %946 }
  0x78   : > { %v949_v16 = vpop.eup %948  ;;  %v444_v17 = vsub.f32 1.0, %v947_v8  ;;  %v521_v18 = vmul.f32 %v947_v8, %v941_v49 }
  0x79   : > { %v951_v21 = vpop.eup %950  ;;  %v461_v23 = vsub.f32 1.0, %v949_v16  ;;  %v566_v30 = vmul.f32 %v949_v16, %v943_v61  ;;  %v635_v61 = vadd.f32 %v634_v15, %v633_v31 }
  0x7a   : > { %v953_v27 = vpop.eup %952  ;;  %v522_v29 = vadd.f32 %v521_v18, %v508_v3  ;;  %v480_v33 = vsub.f32 1.0, %v951_v21  ;;  %v534_v37 = vmul.f32 %v533_v52, %v521_v18  ;;  %v546_v38 = vmul.f32 %v545_v51, %v521_v18 }
  0x7b   : > { %v462_v32 = vmul.f32 %v461_v23, %v444_v17  ;;  %v955_v36 = vpop.eup %954  ;;  %v558_v53 = vmul.f32 %v557_v4, %v521_v18  ;;  %v499_v56 = vsub.f32 1.0, %v953_v27  ;;  %v605_v40 = vmul.f32 %v951_v21, %v945_v2 }
  0x7c   : > { %v567_v39 = vadd.f32 %v566_v30, %v522_v29  ;;  %v644_v49 = vmul.f32 %v955_v36, %v953_v27  ;;  %v673_v52 = vmul.f32 %v880_v1, %v1188_v22  ;;  %v535_v59 = vadd.f32 %v534_v37, %v510_v28 }
  0x7d   : > { %v481_v54 = vmul.f32 %v480_v33, %v462_v32  ;;  %v547_v55 = vadd.f32 %v546_v38, %v512_v34  ;;  %v559_v13 = vadd.f32 %v558_v53, %v514_v57  ;;  %v579_v63 = vmul.f32 %v578_v5, %v566_v30 }
  0x7e   : > { %v606_v48 = vadd.f32 %v605_v40, %v567_v39  ;;  %v588_v51 = vmul.f32 %v587_v9, %v566_v30  ;;  %v597_v0 = vmul.f32 %v596_v10, %v566_v30  ;;  %v672_v2 = vmul.f32 %v883_v50, %v669_v46 }
  0x7f   : > { %v500_v47 = vmul.f32 %v499_v56, %v481_v54  ;;  %v580_v22 = vadd.f32 %v579_v63, %v535_v59  ;;  %v618_v8 = vmul.f32 %v617_v19, %v605_v40  ;;  %v627_v12 = vmul.f32 %v626_v58, %v605_v40 }
  0x80   : > { %v645_v14 = vadd.f32 %v644_v49, %v606_v48  ;;  %v589_v3 = vadd.f32 %v588_v51, %v547_v55  ;;  %v598_v4 = vadd.f32 %v597_v0, %v559_v13  ;;  %v636_v16 = vmul.f32 %v635_v61, %v605_v40 }
  0x81   : > { %v686_v60 = vsub.f32 1.0, %v500_v47  ;;  %v674_v11 = vadd.f32 %v673_v52, %v672_v2  ;;  %v619_v15 = vadd.f32 %v618_v8, %v580_v22  ;;  %v657_v9 = vmul.f32 %v656_v6, %v644_v49 }
  0x82   : > { %956 = vrcp.f32 %v645_v14  ;;  %v628_v17 = vadd.f32 %v627_v12, %v589_v3  ;;  %v637_v5 = vadd.f32 %v636_v16, %v598_v4  ;;  %v666_v10 = vmul.f32 %v665_v7, %v644_v49 }
  0x83   : > { %886 = vst [vmem:[%s1239_s20 + $0x18] sm:$0xff] %v686_v60  ;;  %v675_v18 = vmul.f32 %v674_v11, %v644_v49  ;;  %v658_v20 = vadd.f32 %v657_v9, %v619_v15 }
  0x84   : > { %v667_v21 = vadd.f32 %v666_v10, %v628_v17 }
  0x85   : > { %v676_v23 = vadd.f32 %v675_v18, %v637_v5 }
  0x8c   : > { %v957_v24 = vpop.eup %956 }
  0x8d   : > { %v678_v25 = vmul.f32 %v957_v24, %v658_v20  ;;  %v680_v26 = vmul.f32 %v957_v24, %v667_v21  ;;  %v683_v27 = vmul.f32 %v957_v24, %v676_v23 }
  0x8f   : > { %679 = vst [vmem:[%s1239_s20] sm:$0xff] %v678_v25  ;;  %884 = vst [vmem:[%s1239_s20 + $0x8] sm:$0xff] %v680_v26 }
  0x90   : > { %885 = vst [vmem:[%s1239_s20 + $0x10] sm:$0xff] %v683_v27 }
  0x91 PF: > { %s22_s28 = sadd.s32 1, %s994_s28   ;;  %s1261_s26 = smov %s990_s27 }
  0x92   : > { %p19_p10 = scmp.ge.s32.totalorder %s22_s28, 4   ;;  %s1262_s27 = smov %s1264_s0 }
  0x94   :  { %21 = sbr.rel (!%p19_p10) target bundleno = 17 (0x11), region = 115 }

</bundles_post_ra>
